<compile_context>
chip_gen: v7x
topology: tpu7x:2x2x1
jax: 0.10.0
libtpu: 0.0.40
codegen_flags: <defaults>
</compile_context>

<pallas_src>
import functools

import jax
import jax.numpy as jnp
from jax.experimental import pallas as pl
from jax.experimental.pallas import tpu as pltpu

INPUT_DIM = 28 * 28      # 784
HIDDEN_DIM = 256
LATENT_DIM = 2
NUM_CLASSES = 10

CONCAT_DIM = INPUT_DIM + NUM_CLASSES            # 794
K1_PAD = 896                                    # 7 * 128 (padded concat(x, y) width)
OUT_PAD = 896                                   # padded reconstruction width
SMALL_PAD = 128                                 # lane-dense packed (mu|logvar|logits)


def cvae_mlp_kernel(
    # inputs
    xc_ref, y_ref, eps_ref,
    w1_ref, b1_ref,                    # encoder layer 1 (padded concat weight, bf16)
    w2_ref, b2_ref,                    # encoder layer 2 (bf16)
    whead_ref, bhead_ref,              # fused fc_mu | fc_logvar head (bf16)
    wcls_ref, bcls_ref,                # classifier (bf16, used on VPU)
    wd1z_ref, wd1y_ref, bd1_ref,       # decoder layer 1 split over concat(z, y)
    wd2_ref, bd2_ref,                  # decoder layer 2 (padded to 896 cols, bf16)
    # outputs
    recon_ref,                         # (B, OUT_PAD)   f32
    small_ref,                         # (B, SMALL_PAD) f32: [mu | logvar | logits | 0]
):
    f32 = jnp.float32
    xc = xc_ref[...]
    y = y_ref[...]
    eps = eps_ref[...]

    # ---- encoder: Linear(input+classes, hidden) -> ReLU -> Linear(hidden, hidden)
    h1 = jnp.dot(xc, w1_ref[...].astype(f32), preferred_element_type=f32) + b1_ref[...]
    h1 = jnp.maximum(h1, 0.0)
    hidden = (jnp.dot(h1, w2_ref[...].astype(f32), preferred_element_type=f32)
              + b2_ref[...])

    # ---- fused mu/logvar head: one [256, 2*LATENT] matmul, split in vregs
    hv = (jnp.dot(hidden, whead_ref[...].astype(f32), preferred_element_type=f32)
          + bhead_ref[...])
    mu = hv[:, 0:LATENT_DIM]
    logvar = hv[:, LATENT_DIM:2 * LATENT_DIM]

    # ---- reparameterize (eps supplied from host), all f32 elementwise
    std = jnp.exp(0.5 * logvar)
    z = mu + eps * std

    # ---- classifier on z: K=2 contraction done as VPU broadcast-FMA (no MXU drain)
    wcls = wcls_ref[...].astype(f32)
    logits = bcls_ref[...]
    for k in range(LATENT_DIM):
        logits = logits + z[:, k:k + 1] * wcls[k:k + 1, :]

    # ---- decoder layer 1: z part on VPU (K=2), y part on MXU, then ReLU
    wd1z = wd1z_ref[...].astype(f32)
    d1 = (jnp.dot(y, wd1y_ref[...].astype(f32), preferred_element_type=f32)
          + bd1_ref[...])
    for k in range(LATENT_DIM):
        d1 = d1 + z[:, k:k + 1] * wd1z[k:k + 1, :]
    d1 = jnp.maximum(d1, 0.0)

    # ---- decoder layer 2 (padded N=896) -> Sigmoid
    dec = (jnp.dot(d1, wd2_ref[...].astype(f32), preferred_element_type=f32)
           + bd2_ref[...])
    recon_ref[...] = jax.nn.sigmoid(dec)

    # ---- pack the three narrow outputs into one lane-dense (B, 128) buffer
    small_ref[...] = jnp.zeros_like(small_ref)
    small_ref[:, 0:2 * LATENT_DIM] = hv                                   # mu | logvar
    small_ref[:, 2 * LATENT_DIM:2 * LATENT_DIM + NUM_CLASSES] = logits    # class logits


def init_params(key):
    """Deterministic synthetic parameters (same shapes as the PyTorch module,
    stored as [in, out] so the kernel computes x @ W + b)."""
    ks = jax.random.split(key, 8)

    def lin(k, fan_in, fan_out):
        scale = 1.0 / jnp.sqrt(jnp.float32(fan_in))
        w = jax.random.uniform(k, (fan_in, fan_out), jnp.float32, -scale, scale)
        b = jnp.zeros((1, fan_out), jnp.float32)
        return w, b

    enc_w1, enc_b1 = lin(ks[0], INPUT_DIM + NUM_CLASSES, HIDDEN_DIM)
    enc_w2, enc_b2 = lin(ks[1], HIDDEN_DIM, HIDDEN_DIM)
    mu_w, mu_b = lin(ks[2], HIDDEN_DIM, LATENT_DIM)
    lv_w, lv_b = lin(ks[3], HIDDEN_DIM, LATENT_DIM)
    cls_w, cls_b = lin(ks[4], LATENT_DIM, NUM_CLASSES)
    dec_w1, dec_b1 = lin(ks[5], LATENT_DIM + NUM_CLASSES, HIDDEN_DIM)
    dec_w2, dec_b2 = lin(ks[6], HIDDEN_DIM, INPUT_DIM)

    return dict(
        enc_w1=enc_w1, enc_b1=enc_b1,
        enc_w2=enc_w2, enc_b2=enc_b2,
        mu_w=mu_w, mu_b=mu_b,
        lv_w=lv_w, lv_b=lv_b,
        cls_w=cls_w, cls_b=cls_b,
        dec_w1=dec_w1, dec_b1=dec_b1,
        dec_w2=dec_w2, dec_b2=dec_b2,
    )


def pack_params(params):
    """One-time host-side prep: pad to lane-multiples, fuse mu/logvar head,
    split the decoder concat-weight, and downcast matmul weights to bf16
    (biases stay f32)."""
    bf16 = jnp.bfloat16

    # encoder layer 1: concat(x, y) weight padded 794 -> 896 rows (zero rows).
    w1 = jnp.zeros((K1_PAD, HIDDEN_DIM), jnp.float32)
    w1 = w1.at[:CONCAT_DIM, :].set(params["enc_w1"])

    # decoder layer 2: pad 784 -> 896 output columns (zero cols, discarded later).
    wd2 = jnp.zeros((HIDDEN_DIM, OUT_PAD), jnp.float32)
    wd2 = wd2.at[:, :INPUT_DIM].set(params["dec_w2"])
    bd2 = jnp.zeros((1, OUT_PAD), jnp.float32)
    bd2 = bd2.at[:, :INPUT_DIM].set(params["dec_b2"])

    # fused mu/logvar head.
    whead = jnp.concatenate([params["mu_w"], params["lv_w"]], axis=1)
    bhead = jnp.concatenate([params["mu_b"], params["lv_b"]], axis=1)

    return dict(
        w1=w1.astype(bf16), b1=params["enc_b1"],
        w2=params["enc_w2"].astype(bf16), b2=params["enc_b2"],
        whead=whead.astype(bf16), bhead=bhead,
        wcls=params["cls_w"].astype(bf16), bcls=params["cls_b"],
        wd1z=params["dec_w1"][:LATENT_DIM, :].astype(bf16),
        wd1y=params["dec_w1"][LATENT_DIM:, :].astype(bf16),
        bd1=params["dec_b1"],
        wd2=wd2.astype(bf16), bd2=bd2,
    )


@functools.partial(jax.jit, static_argnames=())
def cvae_mlp_forward(kp, x, y, eps):
    """x: [B, INPUT_DIM] (or any [B, ...], flattened here), y: [B, NUM_CLASSES] one-hot."""
    B = x.shape[0]
    x = x.reshape(B, -1).astype(jnp.float32)
    y = y.reshape(B, -1).astype(jnp.float32)
    eps = eps.astype(jnp.float32)

    # Host-side concat(x, y) padded to a 128-multiple width (single clean matmul).
    xc = jnp.zeros((B, K1_PAD), jnp.float32)
    xc = xc.at[:, :INPUT_DIM].set(x)
    xc = xc.at[:, INPUT_DIM:CONCAT_DIM].set(y)

    vmem = pl.BlockSpec(memory_space=pltpu.MemorySpace.VMEM)
    args = (
        xc, y, eps,
        kp["w1"], kp["b1"],
        kp["w2"], kp["b2"],
        kp["whead"], kp["bhead"],
        kp["wcls"], kp["bcls"],
        kp["wd1z"], kp["wd1y"], kp["bd1"],
        kp["wd2"], kp["bd2"],
    )

    out_shape = (
        jax.ShapeDtypeStruct((B, OUT_PAD), jnp.float32),     # padded reconstruction
        jax.ShapeDtypeStruct((B, SMALL_PAD), jnp.float32),   # packed mu|logvar|logits
    )

    # Whole problem fits in VMEM (~1.2 MB of bf16 weights): gridless single call.
    recon_pad, small = pl.pallas_call(
        cvae_mlp_kernel,
        out_shape=out_shape,
        in_specs=[vmem] * len(args),
        out_specs=(vmem, vmem),
    )(*args)

    recon = recon_pad[:, :INPUT_DIM]
    mu = small[:, :LATENT_DIM]
    logvar = small[:, LATENT_DIM:2 * LATENT_DIM]
    logits = small[:, 2 * LATENT_DIM:2 * LATENT_DIM + NUM_CLASSES]
    return recon, mu, logvar, logits


def reference_forward(params, x, y, eps, quantize_weights=False):
    """Pure-JAX reference mirroring the PyTorch forward exactly.
    With quantize_weights=True it applies the same bf16 weight quantization
    as the kernel (f32 activations/accumulation), for a tight correctness check."""
    def q(w):
        return w.astype(jnp.bfloat16).astype(jnp.float32) if quantize_weights else w

    B = x.shape[0]
    x = x.reshape(B, -1)
    y = y.reshape(B, -1)
    xc = jnp.concatenate([x, y], axis=-1)
    h = jnp.maximum(xc @ q(params["enc_w1"]) + params["enc_b1"], 0.0)
    hidden = h @ q(params["enc_w2"]) + params["enc_b2"]
    mu = hidden @ q(params["mu_w"]) + params["mu_b"]
    logvar = hidden @ q(params["lv_w"]) + params["lv_b"]
    z = mu + eps * jnp.exp(0.5 * logvar)
    logits = z @ q(params["cls_w"]) + params["cls_b"]
    zc = jnp.concatenate([z, y], axis=-1)
    d = jnp.maximum(zc @ q(params["dec_w1"]) + params["dec_b1"], 0.0)
    recon = jax.nn.sigmoid(d @ q(params["dec_w2"]) + params["dec_b2"])
    return recon, mu, logvar, logits


if __name__ == "__main__":
    key = jax.random.PRNGKey(0)
    k_param, k_x, k_y, k_eps = jax.random.split(key, 4)

    B = 8
    params = init_params(k_param)
    kparams = pack_params(params)

    # MNIST-like flattened images in [0, 1) and one-hot labels.
    x = jax.random.uniform(k_x, (B, INPUT_DIM), jnp.float32)
    labels = jax.random.randint(k_y, (B,), 0, NUM_CLASSES)
    y = jax.nn.one_hot(labels, NUM_CLASSES, dtype=jnp.float32)
    # TODO(synk): torch.randn_like inside reparameterize has no in-kernel
    # equivalent tied to torch's RNG; eps is drawn deterministically on host.
    eps = jax.random.normal(k_eps, (B, LATENT_DIM), jnp.float32)

    recon, mu, logvar, logits = jax.block_until_ready(
        cvae_mlp_forward(kparams, x, y, eps)
    )

    assert recon.shape == (B, INPUT_DIM)
    assert mu.shape == (B, LATENT_DIM)
    assert logvar.shape == (B, LATENT_DIM)
    assert logits.shape == (B, NUM_CLASSES)

    # Tight check against a reference with identical bf16 weight quantization.
    q_recon, q_mu, q_logvar, q_logits = reference_forward(
        params, x, y, eps, quantize_weights=True)
    assert jnp.allclose(recon, q_recon, atol=2e-3)
    assert jnp.allclose(mu, q_mu, atol=2e-3)
    assert jnp.allclose(logvar, q_logvar, atol=2e-3)
    assert jnp.allclose(logits, q_logits, atol=2e-3)

    # Loose check against the full-precision (PyTorch-semantics) reference.
    f_recon, f_mu, f_logvar, f_logits = reference_forward(
        params, x, y, eps, quantize_weights=False)
    assert jnp.allclose(recon, f_recon, atol=5e-2)
    assert jnp.allclose(mu, f_mu, atol=5e-2)
    assert jnp.allclose(logvar, f_logvar, atol=5e-2)
    assert jnp.allclose(logits, f_logits, atol=5e-2)

    print("KERNEL_OK")
</pallas_src>

<mosaic_0001>
module attributes {stable_mosaic.version = 11 : i64} {
  func.func @cvae_mlp_kernel(%arg0: memref<8x896xf32, #tpu.memory_space<vmem>>, %arg1: memref<8x10xf32, #tpu.memory_space<vmem>>, %arg2: memref<8x2xf32, #tpu.memory_space<vmem>>, %arg3: memref<896x256xbf16, #tpu.memory_space<vmem>>, %arg4: memref<1x256xf32, #tpu.memory_space<vmem>>, %arg5: memref<256x256xbf16, #tpu.memory_space<vmem>>, %arg6: memref<1x256xf32, #tpu.memory_space<vmem>>, %arg7: memref<256x4xbf16, #tpu.memory_space<vmem>>, %arg8: memref<1x4xf32, #tpu.memory_space<vmem>>, %arg9: memref<2x10xbf16, #tpu.memory_space<vmem>>, %arg10: memref<1x10xf32, #tpu.memory_space<vmem>>, %arg11: memref<2x256xbf16, #tpu.memory_space<vmem>>, %arg12: memref<10x256xbf16, #tpu.memory_space<vmem>>, %arg13: memref<1x256xf32, #tpu.memory_space<vmem>>, %arg14: memref<256x896xbf16, #tpu.memory_space<vmem>>, %arg15: memref<1x896xf32, #tpu.memory_space<vmem>>, %arg16: memref<8x896xf32, #tpu.memory_space<vmem>>, %arg17: memref<8x128xf32, #tpu.memory_space<vmem>>) attributes {dimension_semantics = [], scalar_prefetch = 0 : i64, scratch_operands = 0 : i64, tpu.core_type = #tpu.core_type<tc>} {
    %c0 = arith.constant 0 : index
    %c0_0 = arith.constant 0 : index
    %0 = vector.load %arg0[%c0, %c0_0] : memref<8x896xf32, #tpu.memory_space<vmem>>, vector<8x896xf32>
    %c0_1 = arith.constant 0 : index
    %c0_2 = arith.constant 0 : index
    %1 = vector.load %arg1[%c0_1, %c0_2] : memref<8x10xf32, #tpu.memory_space<vmem>>, vector<8x10xf32>
    %c0_3 = arith.constant 0 : index
    %c0_4 = arith.constant 0 : index
    %2 = vector.load %arg2[%c0_3, %c0_4] : memref<8x2xf32, #tpu.memory_space<vmem>>, vector<8x2xf32>
    %c0_5 = arith.constant 0 : index
    %c0_6 = arith.constant 0 : index
    %3 = vector.load %arg3[%c0_5, %c0_6] : memref<896x256xbf16, #tpu.memory_space<vmem>>, vector<896x256xbf16>
    %4 = arith.extf %3 : vector<896x256xbf16> to vector<896x256xf32>
    %cst = arith.constant dense<0.000000e+00> : vector<8x256xf32>
    %5 = tpu.matmul %0, %4, %cst {dimension_numbers = #tpu.dot_dimension_numbers<[1], [0], [0], [1], [0, 0, 1, 1], [], []>} : vector<8x896xf32>, vector<896x256xf32>, vector<8x256xf32> -> vector<8x256xf32>
    %c0_7 = arith.constant 0 : index
    %c0_8 = arith.constant 0 : index
    %6 = vector.load %arg4[%c0_7, %c0_8] : memref<1x256xf32, #tpu.memory_space<vmem>>, vector<1x256xf32>
    %7 = vector.broadcast %6 : vector<1x256xf32> to vector<8x256xf32>
    %8 = arith.addf %5, %7 : vector<8x256xf32>
    %cst_9 = arith.constant 0.000000e+00 : f32
    %9 = vector.broadcast %cst_9 : f32 to vector<8x256xf32>
    %10 = arith.maximumf %8, %9 : vector<8x256xf32>
    %c0_10 = arith.constant 0 : index
    %c0_11 = arith.constant 0 : index
    %11 = vector.load %arg5[%c0_10, %c0_11] : memref<256x256xbf16, #tpu.memory_space<vmem>>, vector<256x256xbf16>
    %12 = arith.extf %11 : vector<256x256xbf16> to vector<256x256xf32>
    %cst_12 = arith.constant dense<0.000000e+00> : vector<8x256xf32>
    %13 = tpu.matmul %10, %12, %cst_12 {dimension_numbers = #tpu.dot_dimension_numbers<[1], [0], [0], [1], [0, 0, 1, 1], [], []>} : vector<8x256xf32>, vector<256x256xf32>, vector<8x256xf32> -> vector<8x256xf32>
    %c0_13 = arith.constant 0 : index
    %c0_14 = arith.constant 0 : index
    %14 = vector.load %arg6[%c0_13, %c0_14] : memref<1x256xf32, #tpu.memory_space<vmem>>, vector<1x256xf32>
    %15 = vector.broadcast %14 : vector<1x256xf32> to vector<8x256xf32>
    %16 = arith.addf %13, %15 : vector<8x256xf32>
    %c0_15 = arith.constant 0 : index
    %c0_16 = arith.constant 0 : index
    %17 = vector.load %arg7[%c0_15, %c0_16] : memref<256x4xbf16, #tpu.memory_space<vmem>>, vector<256x4xbf16>
    %18 = arith.extf %17 : vector<256x4xbf16> to vector<256x4xf32>
    %cst_17 = arith.constant dense<0.000000e+00> : vector<8x4xf32>
    %19 = tpu.matmul %16, %18, %cst_17 {dimension_numbers = #tpu.dot_dimension_numbers<[1], [0], [0], [1], [0, 0, 1, 1], [], []>} : vector<8x256xf32>, vector<256x4xf32>, vector<8x4xf32> -> vector<8x4xf32>
    %c0_18 = arith.constant 0 : index
    %c0_19 = arith.constant 0 : index
    %20 = vector.load %arg8[%c0_18, %c0_19] : memref<1x4xf32, #tpu.memory_space<vmem>>, vector<1x4xf32>
    %21 = vector.broadcast %20 : vector<1x4xf32> to vector<8x4xf32>
    %22 = arith.addf %19, %21 : vector<8x4xf32>
    %23 = vector.extract_strided_slice %22 {offsets = [0, 0], sizes = [8, 2], strides = [1, 1]} : vector<8x4xf32> to vector<8x2xf32>
    %24 = vector.extract_strided_slice %22 {offsets = [0, 2], sizes = [8, 2], strides = [1, 1]} : vector<8x4xf32> to vector<8x2xf32>
    %cst_20 = arith.constant 5.000000e-01 : f32
    %25 = vector.broadcast %cst_20 : f32 to vector<8x2xf32>
    %26 = arith.mulf %25, %24 : vector<8x2xf32>
    %27 = math.exp %26 : vector<8x2xf32>
    %28 = arith.mulf %2, %27 : vector<8x2xf32>
    %29 = arith.addf %23, %28 : vector<8x2xf32>
    %c0_21 = arith.constant 0 : index
    %c0_22 = arith.constant 0 : index
    %30 = vector.load %arg9[%c0_21, %c0_22] : memref<2x10xbf16, #tpu.memory_space<vmem>>, vector<2x10xbf16>
    %31 = arith.extf %30 : vector<2x10xbf16> to vector<2x10xf32>
    %c0_23 = arith.constant 0 : index
    %c0_24 = arith.constant 0 : index
    %32 = vector.load %arg10[%c0_23, %c0_24] : memref<1x10xf32, #tpu.memory_space<vmem>>, vector<1x10xf32>
    %33 = vector.extract_strided_slice %29 {offsets = [0, 0], sizes = [8, 1], strides = [1, 1]} : vector<8x2xf32> to vector<8x1xf32>
    %34 = vector.extract_strided_slice %31 {offsets = [0, 0], sizes = [1, 10], strides = [1, 1]} : vector<2x10xf32> to vector<1x10xf32>
    %35 = vector.broadcast %33 : vector<8x1xf32> to vector<8x10xf32>
    %36 = vector.broadcast %34 : vector<1x10xf32> to vector<8x10xf32>
    %37 = arith.mulf %35, %36 : vector<8x10xf32>
    %38 = vector.broadcast %32 : vector<1x10xf32> to vector<8x10xf32>
    %39 = arith.addf %38, %37 : vector<8x10xf32>
    %40 = vector.extract_strided_slice %29 {offsets = [0, 1], sizes = [8, 1], strides = [1, 1]} : vector<8x2xf32> to vector<8x1xf32>
    %41 = vector.extract_strided_slice %31 {offsets = [1, 0], sizes = [1, 10], strides = [1, 1]} : vector<2x10xf32> to vector<1x10xf32>
    %42 = vector.broadcast %40 : vector<8x1xf32> to vector<8x10xf32>
    %43 = vector.broadcast %41 : vector<1x10xf32> to vector<8x10xf32>
    %44 = arith.mulf %42, %43 : vector<8x10xf32>
    %45 = arith.addf %39, %44 : vector<8x10xf32>
    %c0_25 = arith.constant 0 : index
    %c0_26 = arith.constant 0 : index
    %46 = vector.load %arg11[%c0_25, %c0_26] : memref<2x256xbf16, #tpu.memory_space<vmem>>, vector<2x256xbf16>
    %47 = arith.extf %46 : vector<2x256xbf16> to vector<2x256xf32>
    %c0_27 = arith.constant 0 : index
    %c0_28 = arith.constant 0 : index
    %48 = vector.load %arg12[%c0_27, %c0_28] : memref<10x256xbf16, #tpu.memory_space<vmem>>, vector<10x256xbf16>
    %49 = arith.extf %48 : vector<10x256xbf16> to vector<10x256xf32>
    %cst_29 = arith.constant dense<0.000000e+00> : vector<8x256xf32>
    %50 = tpu.matmul %1, %49, %cst_29 {dimension_numbers = #tpu.dot_dimension_numbers<[1], [0], [0], [1], [0, 0, 1, 1], [], []>} : vector<8x10xf32>, vector<10x256xf32>, vector<8x256xf32> -> vector<8x256xf32>
    %c0_30 = arith.constant 0 : index
    %c0_31 = arith.constant 0 : index
    %51 = vector.load %arg13[%c0_30, %c0_31] : memref<1x256xf32, #tpu.memory_space<vmem>>, vector<1x256xf32>
    %52 = vector.broadcast %51 : vector<1x256xf32> to vector<8x256xf32>
    %53 = arith.addf %50, %52 : vector<8x256xf32>
    %54 = vector.extract_strided_slice %29 {offsets = [0, 0], sizes = [8, 1], strides = [1, 1]} : vector<8x2xf32> to vector<8x1xf32>
    %55 = vector.extract_strided_slice %47 {offsets = [0, 0], sizes = [1, 256], strides = [1, 1]} : vector<2x256xf32> to vector<1x256xf32>
    %56 = vector.broadcast %54 : vector<8x1xf32> to vector<8x256xf32>
    %57 = vector.broadcast %55 : vector<1x256xf32> to vector<8x256xf32>
    %58 = arith.mulf %56, %57 : vector<8x256xf32>
    %59 = arith.addf %53, %58 : vector<8x256xf32>
    %60 = vector.extract_strided_slice %29 {offsets = [0, 1], sizes = [8, 1], strides = [1, 1]} : vector<8x2xf32> to vector<8x1xf32>
    %61 = vector.extract_strided_slice %47 {offsets = [1, 0], sizes = [1, 256], strides = [1, 1]} : vector<2x256xf32> to vector<1x256xf32>
    %62 = vector.broadcast %60 : vector<8x1xf32> to vector<8x256xf32>
    %63 = vector.broadcast %61 : vector<1x256xf32> to vector<8x256xf32>
    %64 = arith.mulf %62, %63 : vector<8x256xf32>
    %65 = arith.addf %59, %64 : vector<8x256xf32>
    %cst_32 = arith.constant 0.000000e+00 : f32
    %66 = vector.broadcast %cst_32 : f32 to vector<8x256xf32>
    %67 = arith.maximumf %65, %66 : vector<8x256xf32>
    %c0_33 = arith.constant 0 : index
    %c0_34 = arith.constant 0 : index
    %68 = vector.load %arg14[%c0_33, %c0_34] : memref<256x896xbf16, #tpu.memory_space<vmem>>, vector<256x896xbf16>
    %69 = arith.extf %68 : vector<256x896xbf16> to vector<256x896xf32>
    %cst_35 = arith.constant dense<0.000000e+00> : vector<8x896xf32>
    %70 = tpu.matmul %67, %69, %cst_35 {dimension_numbers = #tpu.dot_dimension_numbers<[1], [0], [0], [1], [0, 0, 1, 1], [], []>} : vector<8x256xf32>, vector<256x896xf32>, vector<8x896xf32> -> vector<8x896xf32>
    %c0_36 = arith.constant 0 : index
    %c0_37 = arith.constant 0 : index
    %71 = vector.load %arg15[%c0_36, %c0_37] : memref<1x896xf32, #tpu.memory_space<vmem>>, vector<1x896xf32>
    %72 = vector.broadcast %71 : vector<1x896xf32> to vector<8x896xf32>
    %73 = arith.addf %70, %72 : vector<8x896xf32>
    %74 = arith.negf %73 : vector<8x896xf32>
    %75 = math.exp %74 : vector<8x896xf32>
    %cst_38 = arith.constant 1.000000e+00 : f32
    %76 = vector.broadcast %cst_38 : f32 to vector<8x896xf32>
    %77 = arith.addf %76, %75 : vector<8x896xf32>
    %78 = arith.divf %76, %77 : vector<8x896xf32>
    %c0_39 = arith.constant 0 : index
    %c0_40 = arith.constant 0 : index
    %79 = vector.load %arg16[%c0_39, %c0_40] : memref<8x896xf32, #tpu.memory_space<vmem>>, vector<8x896xf32>
    tpu.vector_store %arg16[%c0_39, %c0_40], %78 {strides = array<i32>} : memref<8x896xf32, #tpu.memory_space<vmem>>, vector<8x896xf32>,
    %cst_41 = arith.constant 0.000000e+00 : f32
    %80 = vector.broadcast %cst_41 : f32 to vector<8x128xf32>
    %c0_42 = arith.constant 0 : index
    %c0_43 = arith.constant 0 : index
    %81 = vector.load %arg17[%c0_42, %c0_43] : memref<8x128xf32, #tpu.memory_space<vmem>>, vector<8x128xf32>
    tpu.vector_store %arg17[%c0_42, %c0_43], %80 {strides = array<i32>} : memref<8x128xf32, #tpu.memory_space<vmem>>, vector<8x128xf32>,
    %c0_44 = arith.constant 0 : index
    %c0_45 = arith.constant 0 : index
    %82 = vector.load %arg17[%c0_44, %c0_45] : memref<8x128xf32, #tpu.memory_space<vmem>>, vector<8x4xf32>
    tpu.vector_store %arg17[%c0_44, %c0_45], %22 {strides = array<i32>} : memref<8x128xf32, #tpu.memory_space<vmem>>, vector<8x4xf32>,
    %c0_46 = arith.constant 0 : index
    %c4 = arith.constant 4 : index
    %83 = vector.load %arg17[%c0_46, %c4] : memref<8x128xf32, #tpu.memory_space<vmem>>, vector<8x10xf32>
    tpu.vector_store %arg17[%c0_46, %c4], %45 {strides = array<i32>} : memref<8x128xf32, #tpu.memory_space<vmem>>, vector<8x10xf32>,
    return
  }
}

</mosaic_0001>

<bundles_post_ra>
// kernel: cvae_mlp_forward.1
= control target key start
LH: loop header
LB: loop body
LE: loop exit
PB: predicated region body
PF: predicated region fallthrough
CT: control target
= control target key end

     0   :  { %s3876_s0 = inlined_call_operand.vmem [shape: f32[8,896], index: 0, kind: input, shape index: {}]   ;;  %s3877_s1 = inlined_call_operand.vmem [shape: f32[8,10], index: 1, kind: input, shape index: {}]   ;;  %s3878_s2 = inlined_call_operand.vmem [shape: f32[8,2], index: 2, kind: input, shape index: {}]   ;;  %s3879_s3 = inlined_call_operand.hbm [shape: bf16[896,256], index: 3, kind: input, shape index: {}]   ;;  %s3880_s4 = inlined_call_operand.vmem [shape: f32[1,256], index: 4, kind: input, shape index: {}]   ;;  %s3881_s5 = inlined_call_operand.vmem [shape: bf16[256,256], index: 5, kind: input, shape index: {}]   ;;  %s3882_s6 = inlined_call_operand.vmem [shape: f32[1,256], index: 6, kind: input, shape index: {}]   ;;  %s3883_s7 = inlined_call_operand.vmem [shape: bf16[256,4], index: 7, kind: input, shape index: {}]   ;;  %s3884_s8 = inlined_call_operand.vmem [shape: f32[1,4], index: 8, kind: input, shape index: {}]   ;;  %s3885_s9 = inlined_call_operand.vmem [shape: bf16[2,10], index: 9, kind: input, shape index: {}]   ;;  %s3886_s10 = inlined_call_operand.vmem [shape: f32[1,10], index: 10, kind: input, shape index: {}]   ;;  %s3887_s11 = inlined_call_operand.vmem [shape: bf16[2,256], index: 11, kind: input, shape index: {}]   ;;  %s3888_s12 = inlined_call_operand.vmem [shape: bf16[10,256], index: 12, kind: input, shape index: {}]   ;;  %s3889_s13 = inlined_call_operand.vmem [shape: f32[1,256], index: 13, kind: input, shape index: {}]   ;;  %s3890_s14 = inlined_call_operand.hbm [shape: bf16[256,896], index: 14, kind: input, shape index: {}]   ;;  %s3891_s15 = inlined_call_operand.vmem [shape: f32[1,896], index: 15, kind: input, shape index: {}]   ;;  %s3892_s16 = inlined_call_operand.hbm [shape: f32[8,896], index: 16, kind: output, shape index: {0}]   ;;  %s3893_s17 = inlined_call_operand.vmem [shape: f32[8,128], index: 17, kind: output, shape index: {1}]  }
   0x1   :  { %3895 = sst [smem:[#allocation11_spill]] %s3876_s0 }
   0x2   :  { %3896 = sst [smem:[#allocation12_spill]] %s3877_s1 }
   0x3   :  { %23 = vsyncpa [#allocation3], 0 }
   0x4   :  { %24 = vsyncpa [#allocation6], 0 }
   0x5   :  { %25 = vsyncpa [#allocation4], 0  ;;  %s3459_s24 = smov [#allocation2]   ;;  %s3387_s28 = scalar_lea.hbm %s3879_s3, 14336 }
   0x6   :  { %s37_s25 = sshll.u32 %s3459_s24, 4  ;;  %p3388_p0 = scmp.ne.s32.totalorder %s3879_s3, %s3387_s28  ;;  %s38_s25 = int_to_ptr.vmem [resolvable:$true] %s37_s25 }
   0x7   :  { %p3391_p1 = scmp.lt.u32.totalorder %s3387_s28, %s3879_s3 }
   0x9   :  { %p3393_p2 = pnand %p3391_p1, %p3388_p0 }
   0xb   :  { %3396 = shalt.err (!%p3393_p2)
}
   0xc   :  { %s3397_s19 = scalar_lea.vmem %s38_s25, 14336  ;;  %p3402_p4 = scmp.lt.s32.totalorder %s38_s25, %s38_s25 }
   0xd   :  { %p3398_p3 = scmp.ne.s32.totalorder %s38_s25, %s3397_s19  ;;  %p3403_p5 = scmp.lt.s32.totalorder %s3397_s19, %s3397_s19 }
   0xf   :  { %p3404_p6 = por %p3403_p5, %p3402_p4 }
  0x11   :  { %p3405_p7 = pnand %p3404_p6, %p3398_p3 }
  0x13   :  { %3408 = shalt.err (!%p3405_p7)
}
  0x14   :  { %s3460_s1 = smov 128   ;;  %s3461_s20 = smov 8  }
  0x15   :  { %43 = dma.hbm_to_vmem [thread:$0]  %s3879_s3, 14336, %s38_s25, [#allocation3], %s3460_s1, %s3460_s1, %s3461_s20  }
  0x16   :  { %s3462_s23 = smov [#allocation5]   ;;  %s3409_s28 = scalar_lea.hbm %s3890_s14, 14336 }
  0x17   :  { %s69_s24 = sshll.u32 %s3462_s23, 4  ;;  %p3410_p8 = scmp.ne.s32.totalorder %s3890_s14, %s3409_s28  ;;  %s70_s24 = int_to_ptr.vmem [resolvable:$true] %s69_s24 }
  0x18   :  { %p3413_p9 = scmp.lt.u32.totalorder %s3409_s28, %s3890_s14 }
  0x1a   :  { %p3415_p10 = pnand %p3413_p9, %p3410_p8 }
  0x1c   :  { %3418 = shalt.err (!%p3415_p10)
}
  0x1d   :  { %s3419_s19 = scalar_lea.vmem %s70_s24, 14336  ;;  %p3424_p12 = scmp.lt.s32.totalorder %s70_s24, %s70_s24 }
  0x1e   :  { %p3420_p11 = scmp.ne.s32.totalorder %s70_s24, %s3419_s19  ;;  %p3425_p13 = scmp.lt.s32.totalorder %s3419_s19, %s3419_s19 }
  0x20   :  { %p3426_p0 = por %p3425_p13, %p3424_p12 }
  0x22   :  { %p3427_p1 = pnand %p3426_p0, %p3420_p11 }
  0x24   :  { %3430 = shalt.err (!%p3427_p1)
}
  0x25   :  { %s3463_s3 = smov 448   ;;  %s3464_s25 = smov 28  }
  0x26   :  { %75 = dma.hbm_to_vmem [thread:$0]  %s3890_s14, 14336, %s70_s24, [#allocation6], %s3463_s3, %s3463_s3, %s3464_s25  }
  0x27   :  { %3453 = dma.done.wait [#allocation3], 14336  }
  0x28   :  { %3454 = vsyncadd [#allocation3], 4294952960 }
  0x29   :  { %3455 = dma.done.wait [#allocation6], 14336  }
  0x2a   :  { %3456 = vsyncadd [#allocation6], 4294952960  ;;  %v2978_v0 = vld [vmem:[#allocation2 + $0x4] ss:$8 sps:$4 sm:$0xff]   ;;  %v2980_v1 = vld [vmem:[#allocation2] ss:$8 sps:$4 sm:$0xff]  }
  0x2b   :  { %2147 = vmatprep.subr.bf16.mxu0 %v2978_v0  ;;  %v2981_v2 = vld [vmem:[#allocation2 + $0x14] ss:$8 sps:$4 sm:$0xff]   ;;  %v2983_v3 = vld [vmem:[#allocation2 + $0x10] ss:$8 sps:$4 sm:$0xff]   ;;  %v2984_v4 = vld [vmem:[#allocation2 + $0x24] ss:$8 sps:$4 sm:$0xff]  }
  0x2c   :  { %2149 = vmatpush1.bf16.msra.mxu0 %v2980_v1  ;;  %v2986_v5 = vld [vmem:[#allocation2 + $0x20] ss:$8 sps:$4 sm:$0xff]   ;;  %v2987_v6 = vld [vmem:[#allocation2 + $0x34] ss:$8 sps:$4 sm:$0xff]   ;;  %v2989_v7 = vld [vmem:[#allocation2 + $0x30] ss:$8 sps:$4 sm:$0xff]  }
  0x2d   :  { %2151 = vmatprep.subr.bf16.mxu0 %v2981_v2  ;;  %v2990_v8 = vld [vmem:[#allocation2 + $0x44] ss:$8 sps:$4 sm:$0xff]   ;;  %v2992_v9 = vld [vmem:[#allocation2 + $0x40] ss:$8 sps:$4 sm:$0xff]   ;;  %v2993_v10 = vld [vmem:[#allocation2 + $0x54] ss:$8 sps:$4 sm:$0xff]  }
  0x2e   :  { %v2995_v11 = vld [vmem:[#allocation2 + $0x50] ss:$8 sps:$4 sm:$0xff]   ;;  %v2996_v12 = vld [vmem:[#allocation2 + $0x64] ss:$8 sps:$4 sm:$0xff]   ;;  %s3897_s22 = sld [smem:[#allocation11_spill]]  ;;  %v3465_v54 = vmov 0.0  }
  0x2f   :  { %v2998_v14 = vld [vmem:[#allocation2 + $0x60] ss:$8 sps:$4 sm:$0xff]   ;;  %v2999_v15 = vld [vmem:[#allocation2 + $0x74] ss:$8 sps:$4 sm:$0xff]   ;;  %v3001_v16 = vld [vmem:[#allocation2 + $0x70] ss:$8 sps:$4 sm:$0xff]   ;;  %1956 = vst [vmem:[%s3893_s17] sm:$0xff] %v3465_v54 }
  0x30   :  { %2153 = vmatpush1.bf16.msra.mxu0 %v2983_v3  ;;  %v3002_v17 = vld [vmem:[#allocation2 + $0x84] ss:$8 sps:$4 sm:$0xff]   ;;  %v3004_v18 = vld [vmem:[#allocation2 + $0x80] ss:$8 sps:$4 sm:$0xff]   ;;  %v3005_v19 = vld [vmem:[#allocation2 + $0x94] ss:$8 sps:$4 sm:$0xff]  }
  0x31   :  { %2155 = vmatprep.subr.bf16.mxu0 %v2984_v4  ;;  %v3007_v20 = vld [vmem:[#allocation2 + $0x90] ss:$8 sps:$4 sm:$0xff]   ;;  %v3008_v21 = vld [vmem:[#allocation2 + $0xa4] ss:$8 sps:$4 sm:$0xff]   ;;  %v3010_v22 = vld [vmem:[#allocation2 + $0xa0] ss:$8 sps:$4 sm:$0xff]  }
  0x32   :  { %v3011_v23 = vld [vmem:[#allocation2 + $0xb4] ss:$8 sps:$4 sm:$0xff]   ;;  %v3013_v24 = vld [vmem:[#allocation2 + $0xb0] ss:$8 sps:$4 sm:$0xff]   ;;  %v3014_v25 = vld [vmem:[#allocation2 + $0xc4] ss:$8 sps:$4 sm:$0xff]  }
  0x33   :  { %v3016_v26 = vld [vmem:[#allocation2 + $0xc0] ss:$8 sps:$4 sm:$0xff]   ;;  %v3017_v27 = vld [vmem:[#allocation2 + $0xd4] ss:$8 sps:$4 sm:$0xff]   ;;  %v3019_v28 = vld [vmem:[#allocation2 + $0xd0] ss:$8 sps:$4 sm:$0xff]  }
  0x34   :  { %2157 = vmatpush1.bf16.msra.mxu0 %v2986_v5  ;;  %v85_v13 = vld [vmem:[%s3897_s22 + $0x8] sm:$0xff]  ;;  %v3023_v31 = vld [vmem:[#allocation2 + $0xf4] ss:$8 sps:$4 sm:$0xff]   ;;  %v3025_v32 = vld [vmem:[#allocation2 + $0xf0] ss:$8 sps:$4 sm:$0xff]   ;;  %vm1110_vm0 = vcmask 1041408  }
  0x35   :  { %2159 = vmatprep.subr.bf16.mxu0 %v2987_v6  ;;  %505 = vmatprep.mubr.f32.mxu0 %v85_v13  ;;  %v3020_v29 = vld [vmem:[#allocation2 + $0xe4] ss:$8 sps:$4 sm:$0xff]   ;;  %v3022_v30 = vld [vmem:[#allocation2 + $0xe0] ss:$8 sps:$4 sm:$0xff]   ;;  %v3029_v36 = vld [vmem:[#allocation2 + $0x114] ss:$8 sps:$4 sm:$0xff]  }
  0x36   :  { %v3026_v33 = vld [vmem:[#allocation2 + $0x104] ss:$8 sps:$4 sm:$0xff]   ;;  %v3028_v34 = vld [vmem:[#allocation2 + $0x100] ss:$8 sps:$4 sm:$0xff]   ;;  %v87_v37 = vld [vmem:[%s3897_s22 + $0x18] sm:$0xff]  ;;  %vm3466_vm1 = vmmov 1  }
  0x37   :  { %v84_v35 = vld [vmem:[%s3897_s22] sm:$0xff]  ;;  %v3031_v38 = vld [vmem:[#allocation2 + $0x110] ss:$8 sps:$4 sm:$0xff]   ;;  %v3035_v41 = vld [vmem:[#allocation2 + $0x134] ss:$8 sps:$4 sm:$0xff]   ;;  %vm1106_vm3 = vcmask 80896  }
  0x38   :  { %2161 = vmatpush1.bf16.msra.mxu0 %v2989_v7  ;;  %v3032_v39 = vld [vmem:[#allocation2 + $0x124] ss:$8 sps:$4 sm:$0xff]   ;;  %v3034_v40 = vld [vmem:[#allocation2 + $0x120] ss:$8 sps:$4 sm:$0xff]   ;;  %v3037_v42 = vld [vmem:[#allocation2 + $0x130] ss:$8 sps:$4 sm:$0xff]  }
  0x39   :  { %2163 = vmatprep.subr.bf16.mxu0 %v2990_v8  ;;  %v3038_v43 = vld [vmem:[#allocation2 + $0x144] ss:$8 sps:$4 sm:$0xff]   ;;  %v3040_v44 = vld [vmem:[#allocation2 + $0x140] ss:$8 sps:$4 sm:$0xff]   ;;  %v3041_v45 = vld [vmem:[#allocation2 + $0x154] ss:$8 sps:$4 sm:$0xff]  }
  0x3a   :  { %v3043_v46 = vld [vmem:[#allocation2 + $0x150] ss:$8 sps:$4 sm:$0xff]   ;;  %v3044_v47 = vld [vmem:[#allocation2 + $0x164] ss:$8 sps:$4 sm:$0xff]   ;;  %v3046_v48 = vld [vmem:[#allocation2 + $0x160] ss:$8 sps:$4 sm:$0xff]  }
  0x3b   :  { %v3047_v49 = vld [vmem:[#allocation2 + $0x174] ss:$8 sps:$4 sm:$0xff]   ;;  %v3049_v50 = vld [vmem:[#allocation2 + $0x170] ss:$8 sps:$4 sm:$0xff]   ;;  %v3050_v51 = vld [vmem:[#allocation2 + $0x184] ss:$8 sps:$4 sm:$0xff]  }
  0x3c   :  { %2165 = vmatpush1.bf16.msra.mxu0 %v2992_v9  ;;  %v3052_v52 = vld [vmem:[#allocation2 + $0x180] ss:$8 sps:$4 sm:$0xff]   ;;  %v3053_v53 = vld [vmem:[#allocation2 + $0x194] ss:$8 sps:$4 sm:$0xff]   ;;  %v3146_v55 = vld [vmem:[%s3881_s5 + $0x4] ss:$8 sps:$4 sm:$0xff]  }
  0x3d   :  { %2167 = vmatprep.subr.bf16.mxu0 %v2993_v10  ;;  %v3148_v56 = vld [vmem:[%s3881_s5] ss:$8 sps:$4 sm:$0xff]   ;;  %v3149_v57 = vld [vmem:[%s3881_s5 + $0x14] ss:$8 sps:$4 sm:$0xff]   ;;  %v3055_v58 = vld [vmem:[#allocation2 + $0x190] ss:$8 sps:$4 sm:$0xff]   ;;  %2371 = vmatprep.subr.bf16.mxu1 %v3146_v55 }
  0x3e   :  { %v3056_v59 = vld [vmem:[#allocation2 + $0x1a4] ss:$8 sps:$4 sm:$0xff]   ;;  %2373 = vmatpush1.bf16.msra.mxu1 %v3148_v56  ;;  %v3151_v60 = vld [vmem:[%s3881_s5 + $0x10] ss:$8 sps:$4 sm:$0xff]   ;;  %v3058_v62 = vld [vmem:[#allocation2 + $0x1a0] ss:$8 sps:$4 sm:$0xff]  }
  0x3f   :  { %2375 = vmatprep.subr.bf16.mxu1 %v3149_v57  ;;  %v3152_v61 = vld [vmem:[%s3881_s5 + $0x24] ss:$8 sps:$4 sm:$0xff]   ;;  %v3059_v63 = vld [vmem:[#allocation2 + $0x1b4] ss:$8 sps:$4 sm:$0xff]   ;;  %v3154_v0 = vld [vmem:[%s3881_s5 + $0x20] ss:$8 sps:$4 sm:$0xff]  }
  0x40   :  { %2169 = vmatpush1.bf16.msra.mxu0 %v2995_v11  ;;  %v3155_v1 = vld [vmem:[%s3881_s5 + $0x34] ss:$8 sps:$4 sm:$0xff]   ;;  %v3061_v2 = vld [vmem:[#allocation2 + $0x1b0] ss:$8 sps:$4 sm:$0xff]   ;;  %v3062_v3 = vld [vmem:[#allocation2 + $0x1c4] ss:$8 sps:$4 sm:$0xff]  }
  0x41   :  { %2171 = vmatprep.subr.bf16.mxu0 %v2996_v12  ;;  %v3157_v4 = vld [vmem:[%s3881_s5 + $0x30] ss:$8 sps:$4 sm:$0xff]   ;;  %v3158_v5 = vld [vmem:[%s3881_s5 + $0x44] ss:$8 sps:$4 sm:$0xff]   ;;  %v3064_v6 = vld [vmem:[#allocation2 + $0x1c0] ss:$8 sps:$4 sm:$0xff]  }
  0x42   :  { %2377 = vmatpush1.bf16.msra.mxu1 %v3151_v60  ;;  %v3065_v7 = vld [vmem:[#allocation2 + $0x1d4] ss:$8 sps:$4 sm:$0xff]   ;;  %v3160_v8 = vld [vmem:[%s3881_s5 + $0x40] ss:$8 sps:$4 sm:$0xff]   ;;  %v3067_v10 = vld [vmem:[#allocation2 + $0x1d0] ss:$8 sps:$4 sm:$0xff]  }
  0x43   :  { %2379 = vmatprep.subr.bf16.mxu1 %v3152_v61  ;;  %v3161_v9 = vld [vmem:[%s3881_s5 + $0x54] ss:$8 sps:$4 sm:$0xff]   ;;  %v3068_v11 = vld [vmem:[#allocation2 + $0x1e4] ss:$8 sps:$4 sm:$0xff]   ;;  %v3163_v12 = vld [vmem:[%s3881_s5 + $0x50] ss:$8 sps:$4 sm:$0xff]  }
  0x44   :  { %2173 = vmatpush1.bf16.msra.mxu0 %v2998_v14  ;;  %v3164_v13 = vld [vmem:[%s3881_s5 + $0x64] ss:$8 sps:$4 sm:$0xff]   ;;  %v3070_v14 = vld [vmem:[#allocation2 + $0x1e0] ss:$8 sps:$4 sm:$0xff]   ;;  %v3103_v55 = vld [vmem:[#allocation2 + $0x290] ss:$8 sps:$4 sm:$0xff]  }
  0x45   :  { %2175 = vmatprep.subr.bf16.mxu0 %v2999_v15  ;;  %v3071_v15 = vld [vmem:[#allocation2 + $0x1f4] ss:$8 sps:$4 sm:$0xff]   ;;  %v3104_v56 = vld [vmem:[#allocation2 + $0x2a4] ss:$8 sps:$4 sm:$0xff]   ;;  %v3106_v57 = vld [vmem:[#allocation2 + $0x2a0] ss:$8 sps:$4 sm:$0xff]  }
  0x46   :  { %2381 = vmatpush1.bf16.msra.mxu1 %v3154_v0  ;;  %v3110_v60 = vld [vmem:[#allocation2 + $0x2c4] ss:$8 sps:$4 sm:$0xff]   ;;  %v3112_v61 = vld [vmem:[#allocation2 + $0x2c0] ss:$8 sps:$4 sm:$0xff]   ;;  %vm2467_vm2 = vmpackc.low %vm1110_vm0, %vm3466_vm1  ;;  %vm1957_vm4 = vcmask 31744   ;;  %vm1963_vm5 = vcmask 113696  }
  0x47   :  { %2383 = vmatprep.subr.bf16.mxu1 %v3155_v1  ;;  %v3116_v0 = vld [vmem:[#allocation2 + $0x2e4] ss:$8 sps:$4 sm:$0xff]   ;;  %v3118_v1 = vld [vmem:[#allocation2 + $0x2e0] ss:$8 sps:$4 sm:$0xff]  }
  0x48   :  { %2177 = vmatpush1.bf16.msra.mxu0 %v3001_v16  ;;  %v3166_v16 = vld [vmem:[%s3881_s5 + $0x60] ss:$8 sps:$4 sm:$0xff]  }
  0x49   :  { %2179 = vmatprep.subr.bf16.mxu0 %v3002_v17  ;;  %v3167_v17 = vld [vmem:[%s3881_s5 + $0x74] ss:$8 sps:$4 sm:$0xff]  }
  0x4a   :  { %2385 = vmatpush1.bf16.msra.mxu1 %v3157_v4  ;;  %v3122_v4 = vld [vmem:[#allocation2 + $0x304] ss:$8 sps:$4 sm:$0xff]  }
  0x4b   :  { %2387 = vmatprep.subr.bf16.mxu1 %v3158_v5  ;;  %v3124_v5 = vld [vmem:[#allocation2 + $0x300] ss:$8 sps:$4 sm:$0xff]  }
  0x4c   :  { %2181 = vmatpush1.bf16.msra.mxu0 %v3004_v18  ;;  %v3073_v18 = vld [vmem:[#allocation2 + $0x1f0] ss:$8 sps:$4 sm:$0xff]  }
  0x4d   :  { %2183 = vmatprep.subr.bf16.mxu0 %v3005_v19  ;;  %v3074_v19 = vld [vmem:[#allocation2 + $0x204] ss:$8 sps:$4 sm:$0xff]  }
  0x4e   :  { %2389 = vmatpush1.bf16.msra.mxu1 %v3160_v8  ;;  %v3127_v8 = vld [vmem:[#allocation2 + $0x310] ss:$8 sps:$4 sm:$0xff]  }
  0x4f   :  { %2391 = vmatprep.subr.bf16.mxu1 %v3161_v9  ;;  %v3128_v9 = vld [vmem:[#allocation2 + $0x324] ss:$8 sps:$4 sm:$0xff]  }
  0x50   :  { %2185 = vmatpush1.bf16.msra.mxu0 %v3007_v20  ;;  %v3169_v20 = vld [vmem:[%s3881_s5 + $0x70] ss:$8 sps:$4 sm:$0xff]  }
  0x51   :  { %2187 = vmatprep.subr.bf16.mxu0 %v3008_v21  ;;  %v3170_v21 = vld [vmem:[%s3881_s5 + $0x84] ss:$8 sps:$4 sm:$0xff]  }
  0x52   :  { %2393 = vmatpush1.bf16.msra.mxu1 %v3163_v12  ;;  %v3133_v12 = vld [vmem:[#allocation2 + $0x330] ss:$8 sps:$4 sm:$0xff]  }
  0x53   :  { %2395 = vmatprep.subr.bf16.mxu1 %v3164_v13  ;;  %v3134_v13 = vld [vmem:[#allocation2 + $0x344] ss:$8 sps:$4 sm:$0xff]  }
  0x54   :  { %2189 = vmatpush1.bf16.msra.mxu0 %v3010_v22  ;;  %v3076_v22 = vld [vmem:[#allocation2 + $0x200] ss:$8 sps:$4 sm:$0xff]  }
  0x55   :  { %2191 = vmatprep.subr.bf16.mxu0 %v3011_v23  ;;  %v86_v23 = vld [vmem:[%s3897_s22 + $0x10] sm:$0xff] }
  0x56   :  { %2397 = vmatpush1.bf16.msra.mxu1 %v3166_v16  ;;  %v3139_v16 = vld [vmem:[#allocation2 + $0x350] ss:$8 sps:$4 sm:$0xff]  }
  0x57   :  { %2399 = vmatprep.subr.bf16.mxu1 %v3167_v17  ;;  %v3140_v17 = vld [vmem:[#allocation2 + $0x364] ss:$8 sps:$4 sm:$0xff]  }
  0x58   :  { %2193 = vmatpush1.bf16.msra.mxu0 %v3013_v24  ;;  %v3077_v24 = vld [vmem:[#allocation2 + $0x214] ss:$8 sps:$4 sm:$0xff]  }
  0x59   :  { %2195 = vmatprep.subr.bf16.mxu0 %v3014_v25  ;;  %v89_v25 = vld [vmem:[%s3897_s22 + $0x28] sm:$0xff] }
  0x5a   :  { %2401 = vmatpush1.bf16.msra.mxu1 %v3169_v20  ;;  %v3145_v20 = vld [vmem:[#allocation2 + $0x370] ss:$8 sps:$4 sm:$0xff]  }
  0x5b   :  { %2403 = vmatprep.subr.bf16.mxu1 %v3170_v21  ;;  %v90_v21 = vld [vmem:[%s3897_s22 + $0x30] sm:$0xff] }
  0x5c   :  { %2197 = vmatpush1.bf16.msra.mxu0 %v3016_v26  ;;  %v3172_v26 = vld [vmem:[%s3881_s5 + $0x80] ss:$8 sps:$4 sm:$0xff]  }
  0x5d   :  { %2199 = vmatprep.subr.bf16.mxu0 %v3017_v27  ;;  %v3173_v27 = vld [vmem:[%s3881_s5 + $0x94] ss:$8 sps:$4 sm:$0xff]  }
  0x5e   :  { %2405 = vmatpush1.bf16.msra.mxu1 %v3172_v26  ;;  %v431_v26 = vlaneseq }
  0x5f   :  { %2407 = vmatprep.subr.bf16.mxu1 %v3173_v27 }
  0x60   :  { %2201 = vmatpush1.bf16.msra.mxu0 %v3019_v28  ;;  %v3079_v28 = vld [vmem:[#allocation2 + $0x210] ss:$8 sps:$4 sm:$0xff]   ;;  %v3711_v27 = vshrl.u32 %v431_v26, 7  ;;  %v3221_v26 = vld [vmem:[#allocation5 + $0xe4] ss:$28 sps:$4 sm:$0xff]  }
  0x61   :  { %2203 = vmatprep.subr.bf16.mxu0 %v3020_v29  ;;  %v3080_v29 = vld [vmem:[#allocation2 + $0x224] ss:$8 sps:$4 sm:$0xff]  }
  0x64   :  { %2205 = vmatpush1.bf16.msra.mxu0 %v3022_v30  ;;  %v3175_v30 = vld [vmem:[%s3881_s5 + $0x90] ss:$8 sps:$4 sm:$0xff]  }
  0x65   :  { %2207 = vmatprep.subr.bf16.mxu0 %v3023_v31  ;;  %v3176_v31 = vld [vmem:[%s3881_s5 + $0xa4] ss:$8 sps:$4 sm:$0xff]   ;;  %2409 = vmatpush1.bf16.msra.mxu1 %v3175_v30  ;;  %v3720_v30 = vsub.s32 1, %v3711_v27 }
  0x66   :  { %2411 = vmatprep.subr.bf16.mxu1 %v3176_v31 }
  0x68   :  { %2209 = vmatpush1.bf16.msra.mxu0 %v3025_v32  ;;  %v3082_v32 = vld [vmem:[#allocation2 + $0x220] ss:$8 sps:$4 sm:$0xff]  }
  0x69   :  { %2211 = vmatprep.subr.bf16.mxu0 %v3026_v33  ;;  %v3083_v33 = vld [vmem:[#allocation2 + $0x234] ss:$8 sps:$4 sm:$0xff]  }
  0x6b   :  { %506 = vmatmul.mubr.f32.vlgmr.msra.gmra.mrb[0].mxu0 %v84_v35  ;;  %v3179_v35 = vld [vmem:[%s3881_s5 + $0xb4] ss:$8 sps:$4 sm:$0xff]  }
  0x6c   :  { %2213 = vmatpush1.bf16.msra.mxu0 %v3028_v34  ;;  %576 = vmatprep.mubr.f32.mxu0 %v87_v37  ;;  %v3178_v34 = vld [vmem:[%s3881_s5 + $0xa0] ss:$8 sps:$4 sm:$0xff]   ;;  %v3086_v37 = vld [vmem:[#allocation2 + $0x244] ss:$8 sps:$4 sm:$0xff]  }
  0x6d   :  { %2215 = vmatprep.subr.bf16.mxu0 %v3029_v36  ;;  %v3085_v36 = vld [vmem:[#allocation2 + $0x230] ss:$8 sps:$4 sm:$0xff]   ;;  %2413 = vmatpush1.bf16.msra.mxu1 %v3178_v34 }
  0x6e   :  { %2415 = vmatprep.subr.bf16.mxu1 %v3179_v35 }
  0x70   :  { %2217 = vmatpush1.bf16.msra.mxu0 %v3031_v38  ;;  %v3181_v38 = vld [vmem:[%s3881_s5 + $0xb0] ss:$8 sps:$4 sm:$0xff]  }
  0x71   :  { %2219 = vmatprep.subr.bf16.mxu0 %v3032_v39  ;;  %v3182_v39 = vld [vmem:[%s3881_s5 + $0xc4] ss:$8 sps:$4 sm:$0xff]   ;;  %2417 = vmatpush1.bf16.msra.mxu1 %v3181_v38 }
  0x72   :  { %2419 = vmatprep.subr.bf16.mxu1 %v3182_v39  ;;  %v1998_v39 = vld [vmem:[%s3883_s7] sm:$0xff]  }
  0x74   :  { %2221 = vmatpush1.bf16.msra.mxu0 %v3034_v40  ;;  %v3088_v40 = vld [vmem:[#allocation2 + $0x240] ss:$8 sps:$4 sm:$0xff]  }
  0x75   :  { %2223 = vmatprep.subr.bf16.mxu0 %v3035_v41  ;;  %v3089_v41 = vld [vmem:[#allocation2 + $0x254] ss:$8 sps:$4 sm:$0xff]  }
  0x78   :  { %2225 = vmatpush1.bf16.msra.mxu0 %v3037_v42  ;;  %v3184_v42 = vld [vmem:[%s3881_s5 + $0xc0] ss:$8 sps:$4 sm:$0xff]  }
  0x79   :  { %2227 = vmatprep.subr.bf16.mxu0 %v3038_v43  ;;  %v3185_v43 = vld [vmem:[%s3881_s5 + $0xd4] ss:$8 sps:$4 sm:$0xff]   ;;  %2421 = vmatpush1.bf16.msra.mxu1 %v3184_v42 }
  0x7a   :  { %2423 = vmatprep.subr.bf16.mxu1 %v3185_v43  ;;  %v2070_v42 = vld [vmem:[%s3883_s7 + $0x50] sm:$0xff]  }
  0x7b   :  { %v2062_v43 = vld [vmem:[%s3883_s7 + $0x10] sm:$0xff]  }
  0x7c   :  { %2229 = vmatpush1.bf16.msra.mxu0 %v3040_v44  ;;  %v3091_v44 = vld [vmem:[#allocation2 + $0x250] ss:$8 sps:$4 sm:$0xff]  }
  0x7d   :  { %2231 = vmatprep.subr.bf16.mxu0 %v3041_v45  ;;  %v3092_v45 = vld [vmem:[#allocation2 + $0x264] ss:$8 sps:$4 sm:$0xff]  }
  0x80   :  { %2233 = vmatpush1.bf16.msra.mxu0 %v3043_v46  ;;  %v3187_v46 = vld [vmem:[%s3881_s5 + $0xd0] ss:$8 sps:$4 sm:$0xff]  }
  0x81   :  { %2235 = vmatprep.subr.bf16.mxu0 %v3044_v47  ;;  %v3188_v47 = vld [vmem:[%s3881_s5 + $0xe4] ss:$8 sps:$4 sm:$0xff]   ;;  %2425 = vmatpush1.bf16.msra.mxu1 %v3187_v46 }
  0x82   :  { %2427 = vmatprep.subr.bf16.mxu1 %v3188_v47  ;;  %v2072_v46 = vld [vmem:[%s3883_s7 + $0x60] sm:$0xff]  }
  0x83   :  { %v2064_v47 = vld [vmem:[%s3883_s7 + $0x20] sm:$0xff]  }
  0x84   :  { %2237 = vmatpush1.bf16.msra.mxu0 %v3046_v48  ;;  %v3094_v48 = vld [vmem:[#allocation2 + $0x260] ss:$8 sps:$4 sm:$0xff]  }
  0x85   :  { %2239 = vmatprep.subr.bf16.mxu0 %v3047_v49  ;;  %v3095_v49 = vld [vmem:[#allocation2 + $0x274] ss:$8 sps:$4 sm:$0xff]  }
  0x88   :  { %2241 = vmatpush1.bf16.msra.mxu0 %v3049_v50  ;;  %v3097_v50 = vld [vmem:[#allocation2 + $0x270] ss:$8 sps:$4 sm:$0xff]  }
  0x89   :  { %2243 = vmatprep.subr.bf16.mxu0 %v3050_v51  ;;  %v3098_v51 = vld [vmem:[#allocation2 + $0x284] ss:$8 sps:$4 sm:$0xff]  }
  0x8c   :  { %2245 = vmatpush1.bf16.msra.mxu0 %v3052_v52  ;;  %v3100_v52 = vld [vmem:[#allocation2 + $0x280] ss:$8 sps:$4 sm:$0xff]  }
  0x8d   :  { %2247 = vmatprep.subr.bf16.mxu0 %v3053_v53  ;;  %v3101_v53 = vld [vmem:[#allocation2 + $0x294] ss:$8 sps:$4 sm:$0xff]  }
  0x90   :  { %2249 = vmatpush1.bf16.msra.mxu0 %v3055_v58  ;;  %v3107_v58 = vld [vmem:[#allocation2 + $0x2b4] ss:$8 sps:$4 sm:$0xff]  }
  0x91   :  { %2251 = vmatprep.subr.bf16.mxu0 %v3056_v59  ;;  %v3109_v59 = vld [vmem:[#allocation2 + $0x2b0] ss:$8 sps:$4 sm:$0xff]  }
  0x94   :  { %2253 = vmatpush1.bf16.msra.mxu0 %v3058_v62  ;;  %v3113_v62 = vld [vmem:[#allocation2 + $0x2d4] ss:$8 sps:$4 sm:$0xff]  }
  0x95   :  { %2255 = vmatprep.subr.bf16.mxu0 %v3059_v63  ;;  %v3115_v63 = vld [vmem:[#allocation2 + $0x2d0] ss:$8 sps:$4 sm:$0xff]  }
  0x98   :  { %2257 = vmatpush1.bf16.msra.mxu0 %v3061_v2  ;;  %v3119_v2 = vld [vmem:[#allocation2 + $0x2f4] ss:$8 sps:$4 sm:$0xff]  }
  0x99   :  { %2259 = vmatprep.subr.bf16.mxu0 %v3062_v3  ;;  %v3121_v3 = vld [vmem:[#allocation2 + $0x2f0] ss:$8 sps:$4 sm:$0xff]  }
  0x9c   :  { %2261 = vmatpush1.bf16.msra.mxu0 %v3064_v6  ;;  %v88_v6 = vld [vmem:[%s3897_s22 + $0x20] sm:$0xff]  ;;  %s3898_s22 = sld [smem:[#allocation12_spill]] }
  0x9d   :  { %2263 = vmatprep.subr.bf16.mxu0 %v3065_v7  ;;  %v3125_v7 = vld [vmem:[#allocation2 + $0x314] ss:$8 sps:$4 sm:$0xff]  }
  0xa0   :  { %2265 = vmatpush1.bf16.msra.mxu0 %v3067_v10  ;;  %v3130_v10 = vld [vmem:[#allocation2 + $0x320] ss:$8 sps:$4 sm:$0xff]  }
  0xa1   :  { %2267 = vmatprep.subr.bf16.mxu0 %v3068_v11  ;;  %v3131_v11 = vld [vmem:[#allocation2 + $0x334] ss:$8 sps:$4 sm:$0xff]  }
  0xa4   :  { %2269 = vmatpush1.bf16.msra.mxu0 %v3070_v14  ;;  %v3136_v14 = vld [vmem:[#allocation2 + $0x340] ss:$8 sps:$4 sm:$0xff]  }
  0xa5   :  { %2271 = vmatprep.subr.bf16.mxu0 %v3071_v15  ;;  %v3137_v15 = vld [vmem:[#allocation2 + $0x354] ss:$8 sps:$4 sm:$0xff]  }
  0xa8   :  { %2273 = vmatpush1.bf16.msra.mxu0 %v3073_v18  ;;  %v3142_v18 = vld [vmem:[#allocation2 + $0x360] ss:$8 sps:$4 sm:$0xff]  }
  0xa9   :  { %2275 = vmatprep.subr.bf16.mxu0 %v3074_v19  ;;  %v3143_v19 = vld [vmem:[#allocation2 + $0x374] ss:$8 sps:$4 sm:$0xff]  }
  0xab   :  { %577 = vmatmul.mubr.f32.vlgmr.msra.gmra.mrb[0].mxu0 %v86_v23  ;;  %v3191_v23 = vld [vmem:[%s3881_s5 + $0xf4] ss:$8 sps:$4 sm:$0xff]  }
  0xac   :  { %2277 = vmatpush1.bf16.msra.mxu0 %v3076_v22  ;;  %647 = vmatprep.mubr.f32.mxu0 %v89_v25  ;;  %v3190_v22 = vld [vmem:[%s3881_s5 + $0xe0] ss:$8 sps:$4 sm:$0xff]  }
  0xad   :  { %2279 = vmatprep.subr.bf16.mxu0 %v3077_v24  ;;  %2429 = vmatpush1.bf16.msra.mxu1 %v3190_v22  ;;  %v3193_v24 = vld [vmem:[%s3881_s5 + $0xf0] ss:$8 sps:$4 sm:$0xff]   ;;  %v2068_v25 = vld [vmem:[%s3883_s7 + $0x40] sm:$0xff]   ;;  %v3215_v22 = vld [vmem:[#allocation5 + $0xac] ss:$28 sps:$4 sm:$0xff]  }
  0xae   :  { %2431 = vmatprep.subr.bf16.mxu1 %v3191_v23  ;;  %v3218_v23 = vld [vmem:[#allocation5 + $0xbc] ss:$28 sps:$4 sm:$0xff]  }
  0xb0   :  { %2281 = vmatpush1.bf16.msra.mxu0 %v3079_v28  ;;  %v3714_v28 = vsub.s32 0, %v3711_v27 }
  0xb1   :  { %2283 = vmatprep.subr.bf16.mxu0 %v3080_v29  ;;  %2433 = vmatpush1.bf16.msra.mxu1 %v3193_v24  ;;  %v429_v29 = vld [vmem:[%s3880_s4] sm:$0x3]  ;;  %v3217_v24 = vld [vmem:[#allocation5 + $0xa8] ss:$28 sps:$4 sm:$0xff]  }
  0xb2   :  { %2435 = vmatprep.subr.bf16.mxu1 %v2068_v25  ;;  %v434_v31 = vrot.slane %v429_v29, %v3714_v28  ;;  %v3220_v25 = vld [vmem:[#allocation5 + $0xb8] ss:$28 sps:$4 sm:$0xff]  }
  0xb4   :  { %2285 = vmatpush1.bf16.msra.mxu0 %v3082_v32  ;;  %v438_v32 = vrot.slane %v429_v29, %v3720_v30  ;;  %v3224_v29 = vld [vmem:[#allocation5 + $0xf4] ss:$28 sps:$4 sm:$0xff]  }
  0xb5   :  { %2287 = vmatprep.subr.bf16.mxu0 %v3083_v33 }
  0xb8   :  { %2289 = vmatpush1.bf16.msra.mxu0 %v3085_v36 }
  0xb9   :  { %2291 = vmatprep.subr.bf16.mxu0 %v3086_v37 }
  0xbc   :  { %2293 = vmatpush1.bf16.msra.mxu0 %v3088_v40  ;;  %v2069_v40 = vld [vmem:[%s3883_s7 + $0x48] sm:$0xff]  }
  0xbd   :  { %2295 = vmatprep.subr.bf16.mxu0 %v3089_v41  ;;  %v2061_v41 = vld [vmem:[%s3883_s7 + $0x8] sm:$0xff]  }
  0xc0   :  { %2297 = vmatpush1.bf16.msra.mxu0 %v3091_v44  ;;  %v2071_v44 = vld [vmem:[%s3883_s7 + $0x58] sm:$0xff]  }
  0xc1   :  { %2299 = vmatprep.subr.bf16.mxu0 %v3092_v45  ;;  %v2063_v45 = vld [vmem:[%s3883_s7 + $0x18] sm:$0xff]  }
  0xc4   :  { %2301 = vmatpush1.bf16.msra.mxu0 %v3094_v48  ;;  %v2073_v48 = vld [vmem:[%s3883_s7 + $0x68] sm:$0xff]  }
  0xc5   :  { %2303 = vmatprep.subr.bf16.mxu0 %v3095_v49  ;;  %v2065_v49 = vld [vmem:[%s3883_s7 + $0x28] sm:$0xff]  }
  0xc8   :  { %2305 = vmatpush1.bf16.msra.mxu0 %v3097_v50  ;;  %v2074_v50 = vld [vmem:[%s3883_s7 + $0x70] sm:$0xff]  }
  0xc9   :  { %2307 = vmatprep.subr.bf16.mxu0 %v3098_v51  ;;  %v2066_v51 = vld [vmem:[%s3883_s7 + $0x30] sm:$0xff]  }
  0xcc   :  { %2309 = vmatpush1.bf16.msra.mxu0 %v3100_v52  ;;  %v2075_v52 = vld [vmem:[%s3883_s7 + $0x78] sm:$0xff]  }
  0xcd   :  { %2311 = vmatprep.subr.bf16.mxu0 %v3101_v53  ;;  %v2067_v53 = vld [vmem:[%s3883_s7 + $0x38] sm:$0xff]  }
  0xd0   :  { %2313 = vmatpush1.bf16.msra.mxu0 %v3103_v55  ;;  %v823_v55 = vld [vmem:[%s3882_s6] sm:$0x3] }
  0xd1   :  { %2315 = vmatprep.subr.bf16.mxu0 %v3104_v56  ;;  %v832_v56 = vrot.slane %v823_v55, %v3720_v30 }
  0xd4   :  { %2317 = vmatpush1.bf16.msra.mxu0 %v3106_v57  ;;  %v828_v57 = vrot.slane %v823_v55, %v3714_v28  ;;  %v3260_v55 = vld [vmem:[#allocation5 + $0x244] ss:$28 sps:$4 sm:$0xff]  }
  0xd5   :  { %2319 = vmatprep.subr.bf16.mxu0 %v3107_v58 }
  0xd8   :  { %2321 = vmatpush1.bf16.msra.mxu0 %v3109_v59 }
  0xd9   :  { %2323 = vmatprep.subr.bf16.mxu0 %v3110_v60 }
  0xdc   :  { %2325 = vmatpush1.bf16.msra.mxu0 %v3112_v61 }
  0xdd   :  { %2327 = vmatprep.subr.bf16.mxu0 %v3113_v62  ;;  %v3194_v62 = vld [vmem:[%s3888_s12 + $0x4] ss:$8 sps:$4 sm:$0x1f]  }
  0xe0   :  { %2329 = vmatpush1.bf16.msra.mxu0 %v3115_v63  ;;  %v3196_v63 = vld [vmem:[%s3888_s12] ss:$8 sps:$4 sm:$0x1f]  }
  0xe1   :  { %2331 = vmatprep.subr.bf16.mxu0 %v3116_v0  ;;  %v91_v0 = vld [vmem:[%s3898_s22] sm:$0xff] }
  0xe4   :  { %2333 = vmatpush1.bf16.msra.mxu0 %v3118_v1  ;;  %v1985_v1 = vld [vmem:[%s3884_s8] ss:$0 sm:$0xff]  ;;  %s3469_s8 = smov 126  }
  0xe5   :  { %2335 = vmatprep.subr.bf16.mxu0 %v3119_v2 }
  0xe8   :  { %2337 = vmatpush1.bf16.msra.mxu0 %v3121_v3 }
  0xe9   :  { %2339 = vmatprep.subr.bf16.mxu0 %v3122_v4 }
  0xeb   :  { %648 = vmatmul.mubr.f32.vlgmr.msra.gmra.mrb[0].mxu0 %v88_v6 }
  0xec   :  { %2341 = vmatpush1.bf16.msra.mxu0 %v3124_v5  ;;  %718 = vmatprep.mubr.f32.mxu0 %v3465_v54 }
  0xed   :  { %2343 = vmatprep.subr.bf16.mxu0 %v3125_v7  ;;  %v3467_v7 = vmov 1  }
  0xee   :  { %2976 = vset.pattern.permute.xlu1 %v3467_v7 }
  0xf0   :  { %2345 = vmatpush1.bf16.msra.mxu0 %v3127_v8  ;;  %v3468_v8 = vmov 0  }
  0xf1   :  { %2347 = vmatprep.subr.bf16.mxu0 %v3128_v9  ;;  %2975 = vset.pattern.permute.xlu0 %v3468_v8  ;;  %v3197_v9 = vld [vmem:[#allocation5 + $0x4] ss:$28 sps:$4 sm:$0xff]  }
  0xf4   :  { %2349 = vmatpush1.bf16.msra.mxu0 %v3130_v10  ;;  %v3199_v10 = vld [vmem:[#allocation5] ss:$28 sps:$4 sm:$0xff]  }
  0xf5   :  { %2351 = vmatprep.subr.bf16.mxu0 %v3131_v11  ;;  %v3200_v11 = vld [vmem:[#allocation5 + $0x14] ss:$28 sps:$4 sm:$0xff]  }
  0xf8   :  { %2353 = vmatpush1.bf16.msra.mxu0 %v3133_v12  ;;  %v3202_v12 = vld [vmem:[#allocation5 + $0x10] ss:$28 sps:$4 sm:$0xff]  }
  0xf9   :  { %2355 = vmatprep.subr.bf16.mxu0 %v3134_v13  ;;  %v3203_v13 = vld [vmem:[#allocation5 + $0x3c] ss:$28 sps:$4 sm:$0xff]  }
  0xfc   :  { %2357 = vmatpush1.bf16.msra.mxu0 %v3136_v14  ;;  %v3206_v14 = vld [vmem:[#allocation5 + $0x4c] ss:$28 sps:$4 sm:$0xff]  }
  0xfd   :  { %2359 = vmatprep.subr.bf16.mxu0 %v3137_v15  ;;  %v3205_v15 = vld [vmem:[#allocation5 + $0x38] ss:$28 sps:$4 sm:$0xff]  }
 0x100   :  { %2361 = vmatpush1.bf16.msra.mxu0 %v3139_v16  ;;  %v3208_v16 = vld [vmem:[#allocation5 + $0x48] ss:$28 sps:$4 sm:$0xff]  }
 0x101   :  { %2363 = vmatprep.subr.bf16.mxu0 %v3140_v17  ;;  %v3209_v17 = vld [vmem:[#allocation5 + $0x74] ss:$28 sps:$4 sm:$0xff]  }
 0x104   :  { %2365 = vmatpush1.bf16.msra.mxu0 %v3142_v18  ;;  %v3212_v18 = vld [vmem:[#allocation5 + $0x84] ss:$28 sps:$4 sm:$0xff]  }
 0x105   :  { %2367 = vmatprep.subr.bf16.mxu0 %v3143_v19  ;;  %v3211_v19 = vld [vmem:[#allocation5 + $0x70] ss:$28 sps:$4 sm:$0xff]  }
 0x108   :  { %2369 = vmatpush1.bf16.msra.mxu0 %v3145_v20  ;;  %v3214_v20 = vld [vmem:[#allocation5 + $0x80] ss:$28 sps:$4 sm:$0xff]  }
 0x109   :  { %2601 = vmatprep.subr.bf16.mxu0 %v3200_v11 }
 0x10b   :  { %719 = vmatmul.mubr.f32.vlgmr.msra.gmra.mrb[0].mxu0 %v90_v21 }
 0x10c   :  { %2603 = vmatpush1.bf16.msra.mxu0 %v3202_v12 }
 0x10d   :  { %2605 = vmatprep.subr.bf16.mxu0 %v3206_v14  ;;  %v3283_v14 = vld [vmem:[#allocation5 + $0x310] ss:$28 sps:$4 sm:$0xff]  }
 0x110   :  { %2607 = vmatpush1.bf16.msra.mxu0 %v3208_v16  ;;  %v3286_v16 = vld [vmem:[#allocation5 + $0x320] ss:$28 sps:$4 sm:$0xff]  }
 0x111   :  { %2609 = vmatprep.subr.bf16.mxu0 %v3212_v18  ;;  %v3289_v18 = vld [vmem:[#allocation5 + $0x348] ss:$28 sps:$4 sm:$0xff]  }
 0x114   :  { %2611 = vmatpush1.bf16.msra.mxu0 %v3214_v20  ;;  %v3292_v20 = vld [vmem:[#allocation5 + $0x358] ss:$28 sps:$4 sm:$0xff]  }
 0x115   :  { %2613 = vmatprep.subr.bf16.mxu0 %v3218_v23 }
 0x118   :  { %2615 = vmatpush1.bf16.msra.mxu0 %v3220_v25  ;;  %v1094_v25 = vld [vmem:[%s3889_s13] sm:$0x3]  ;;  %s3470_s13 = smov 4  }
 0x119   :  { %2617 = vmatprep.subr.bf16.mxu0 %v3224_v29 }
 0x1de   :  { %v720_v33 = vpop.f32.mrb[0].mxu0 }
 0x1df   :  { %v2696_v34 = vadd.f32 %v720_v33, %v434_v31  ;;  %v722_v35 = vpop.f32.mrb[1].mxu0  ;;  %v3223_v31 = vld [vmem:[#allocation5 + $0xe0] ss:$28 sps:$4 sm:$0xff]  }
 0x1e0   :  { %v2697_v36 = vadd.f32 %v722_v35, %v438_v32  ;;  %v3226_v32 = vld [vmem:[#allocation5 + $0xf0] ss:$28 sps:$4 sm:$0xff]   ;;  %v3227_v33 = vld [vmem:[#allocation5 + $0x11c] ss:$28 sps:$4 sm:$0xff]  }
 0x1e1   :  { %v725_v38 = vmax.f32 %v2696_v34, 0.0  ;;  %v3230_v34 = vld [vmem:[#allocation5 + $0x12c] ss:$28 sps:$4 sm:$0xff]   ;;  %2619 = vmatpush1.bf16.msra.mxu0 %v3226_v32  ;;  %v3229_v35 = vld [vmem:[#allocation5 + $0x118] ss:$28 sps:$4 sm:$0xff]   ;;  %v1099_v32 = vrot.slane %v1094_v25, %v3714_v28 }
 0x1e2   :  { %v726_v37 = vmax.f32 %v2697_v36, 0.0  ;;  %v3232_v36 = vld [vmem:[#allocation5 + $0x128] ss:$28 sps:$4 sm:$0xff]   ;;  %2621 = vmatprep.subr.bf16.mxu0 %v3230_v34 }
 0x1e4   :  { %899 = vmatprep.mubr.f32.mxu1 %v726_v37  ;;  %v3233_v37 = vld [vmem:[#allocation5 + $0x154] ss:$28 sps:$4 sm:$0xff]  }
 0x1e5   :  { %900 = vmatmul.mubr.f32.vlgmr.msra.gmra.mrb[0].mxu1 %v725_v38  ;;  %v3236_v38 = vld [vmem:[#allocation5 + $0x164] ss:$28 sps:$4 sm:$0xff]   ;;  %2623 = vmatpush1.bf16.msra.mxu0 %v3232_v36 }
 0x1e6   :  { %2437 = vmatpush3.bf16.msra.mxu1 %v1998_v39  ;;  %v3235_v39 = vld [vmem:[#allocation5 + $0x150] ss:$28 sps:$4 sm:$0xff]   ;;  %2625 = vmatprep.subr.bf16.mxu0 %v3236_v38 }
 0x1e7   :  { %2439 = vmatprep.subr.bf16.mxu1 %v2069_v40  ;;  %v3238_v40 = vld [vmem:[#allocation5 + $0x160] ss:$28 sps:$4 sm:$0xff]  }
 0x1e9   :  { %2627 = vmatpush1.bf16.msra.mxu0 %v3238_v40 }
 0x1ea   :  { %2441 = vmatpush3.bf16.msra.mxu1 %v2061_v41  ;;  %v3239_v41 = vld [vmem:[#allocation5 + $0x18c] ss:$28 sps:$4 sm:$0xff]  }
 0x1eb   :  { %2443 = vmatprep.subr.bf16.mxu1 %v2070_v42  ;;  %v3242_v42 = vld [vmem:[#allocation5 + $0x19c] ss:$28 sps:$4 sm:$0xff]  }
 0x1ec   :  { %2629 = vmatprep.subr.bf16.mxu0 %v3242_v42 }
 0x1ee   :  { %2445 = vmatpush3.bf16.msra.mxu1 %v2062_v43  ;;  %v3241_v43 = vld [vmem:[#allocation5 + $0x188] ss:$28 sps:$4 sm:$0xff]  }
 0x1ef   :  { %2447 = vmatprep.subr.bf16.mxu1 %v2071_v44  ;;  %v3244_v44 = vld [vmem:[#allocation5 + $0x198] ss:$28 sps:$4 sm:$0xff]  }
 0x1f0   :  { %2631 = vmatpush1.bf16.msra.mxu0 %v3244_v44 }
 0x1f2   :  { %2449 = vmatpush3.bf16.msra.mxu1 %v2063_v45  ;;  %v3245_v45 = vld [vmem:[#allocation5 + $0x1c4] ss:$28 sps:$4 sm:$0xff]  }
 0x1f3   :  { %2451 = vmatprep.subr.bf16.mxu1 %v2072_v46  ;;  %v3248_v46 = vld [vmem:[#allocation5 + $0x1d4] ss:$28 sps:$4 sm:$0xff]  }
 0x1f4   :  { %2633 = vmatprep.subr.bf16.mxu0 %v3248_v46 }
 0x1f6   :  { %2453 = vmatpush3.bf16.msra.mxu1 %v2064_v47  ;;  %v3247_v47 = vld [vmem:[#allocation5 + $0x1c0] ss:$28 sps:$4 sm:$0xff]  }
 0x1f7   :  { %2455 = vmatprep.subr.bf16.mxu1 %v2073_v48  ;;  %v3250_v48 = vld [vmem:[#allocation5 + $0x1d0] ss:$28 sps:$4 sm:$0xff]  }
 0x1f8   :  { %2635 = vmatpush1.bf16.msra.mxu0 %v3250_v48 }
 0x1fa   :  { %2457 = vmatpush3.bf16.msra.mxu1 %v2065_v49  ;;  %v3251_v49 = vld [vmem:[#allocation5 + $0x1fc] ss:$28 sps:$4 sm:$0xff]  }
 0x1fb   :  { %2459 = vmatprep.subr.bf16.mxu1 %v2074_v50  ;;  %v3254_v50 = vld [vmem:[#allocation5 + $0x20c] ss:$28 sps:$4 sm:$0xff]  }
 0x1fc   :  { %2637 = vmatprep.subr.bf16.mxu0 %v3254_v50 }
 0x1fe   :  { %2461 = vmatpush3.bf16.msra.mxu1 %v2066_v51  ;;  %v3253_v51 = vld [vmem:[#allocation5 + $0x1f8] ss:$28 sps:$4 sm:$0xff]  }
 0x1ff   :  { %2463 = vmatprep.subr.bf16.mxu1 %v2075_v52  ;;  %v3256_v52 = vld [vmem:[#allocation5 + $0x208] ss:$28 sps:$4 sm:$0xff]  }
 0x200   :  { %2639 = vmatpush1.bf16.msra.mxu0 %v3256_v52 }
 0x201   :  { %2641 = vmatprep.subr.bf16.mxu0 %v3260_v55 }
 0x202   :  { %2465 = vmatpush3.bf16.msra.mxu1 %v2067_v53  ;;  %v3257_v53 = vld [vmem:[#allocation5 + $0x234] ss:$28 sps:$4 sm:$0xff]  }
 0x203   :  { %2468 = vmatprep.subr.msk.bf16.mxu1 %vm2467_vm2, %v3194_v62  ;;  %v3269_v62 = vld [vmem:[#allocation5 + $0x2a4] ss:$28 sps:$4 sm:$0xff]  }
 0x2b8   :  { %v901_v58 = vpop.f32.mrb[0].mxu1 }
 0x2b9   :  { %v903_v59 = vpop.f32.mrb[1].mxu1  ;;  %v902_v61 = vadd.f32 %v901_v58, %v828_v57  ;;  %v3262_v57 = vld [vmem:[#allocation5 + $0x240] ss:$28 sps:$4 sm:$0xff]   ;;  %v3263_v58 = vld [vmem:[#allocation5 + $0x26c] ss:$28 sps:$4 sm:$0xff]  }
 0x2ba   :  { %v904_v60 = vadd.f32 %v903_v59, %v832_v56  ;;  %v3259_v56 = vld [vmem:[#allocation5 + $0x230] ss:$28 sps:$4 sm:$0xff]   ;;  %v3266_v59 = vld [vmem:[#allocation5 + $0x27c] ss:$28 sps:$4 sm:$0xff]   ;;  %2643 = vmatpush1.bf16.msra.mxu0 %v3262_v57 }
 0x2bb   :  { %2645 = vmatprep.subr.bf16.mxu0 %v3266_v59 }
 0x2bc   :  { %1041 = vmatprep.mubr.f32.mxu1 %v904_v60  ;;  %v3265_v60 = vld [vmem:[#allocation5 + $0x268] ss:$28 sps:$4 sm:$0xff]  }
 0x2bd   :  { %1042 = vmatmul.mubr.f32.vlgmr.msra.gmra.mrb[2].mxu1 %v902_v61  ;;  %v3268_v61 = vld [vmem:[#allocation5 + $0x278] ss:$28 sps:$4 sm:$0xff]  }
 0x2be   :  { %1181 = vmatprep.mubr.f32.mxu1 %v3465_v54  ;;  %2471 = vmatpush1.bf16.msk.msra.mxu1 %vm2467_vm2, %v3196_v63  ;;  %v3272_v63 = vld [vmem:[#allocation5 + $0x2b4] ss:$28 sps:$4 sm:$0xff]  }
 0x2bf   :  { %2473 = vmatprep.subr.bf16.mxu1 %v3197_v9  ;;  %2647 = vmatpush1.bf16.msra.mxu0 %v3268_v61  ;;  %v92_v9 = vld [vmem:[%s3878_s2] sm:$0xff] }
 0x2c0   :  { %2649 = vmatprep.subr.bf16.mxu0 %v3272_v63  ;;  %v3296_v63 = vld [vmem:[#allocation5 + $0x44] ss:$28 sps:$4 sm:$0xff]  }
 0x2c1   :  { %1989 = vmatmul.mubr.msk.f32.vlgmr.msra.gmra.mrb[4].mxu1 %vm1106_vm3, %v91_v0  ;;  %v3271_v0 = vld [vmem:[#allocation5 + $0x2a0] ss:$28 sps:$4 sm:$0xff]  }
 0x2c2   :  { %2475 = vmatpush1.bf16.msra.mxu1 %v3199_v10 }
 0x2c3   :  { %2477 = vmatprep.subr.bf16.mxu1 %v3203_v13  ;;  %v3281_v13 = vld [vmem:[#allocation5 + $0x314] ss:$28 sps:$4 sm:$0xff]  }
 0x2c6   :  { %2479 = vmatpush1.bf16.msra.mxu1 %v3205_v15  ;;  %v3284_v15 = vld [vmem:[#allocation5 + $0x324] ss:$28 sps:$4 sm:$0xff]  }
 0x2c7   :  { %2481 = vmatprep.subr.bf16.mxu1 %v3209_v17  ;;  %v3287_v17 = vld [vmem:[#allocation5 + $0x34c] ss:$28 sps:$4 sm:$0xff]  }
 0x2ca   :  { %2483 = vmatpush1.bf16.msra.mxu1 %v3211_v19  ;;  %v3290_v19 = vld [vmem:[#allocation5 + $0x35c] ss:$28 sps:$4 sm:$0xff]  }
 0x2cb   :  { %2485 = vmatprep.subr.bf16.mxu1 %v3215_v22  ;;  %v1056_v22 = vld [vmem:[%s3885_s9] sm:$0x1] }
 0x2ce   :  { %2487 = vmatpush1.bf16.msra.mxu1 %v3217_v24  ;;  %v1195_v24 = vsub.s32 2, %v3711_v27 }
 0x2cf   :  { %2489 = vmatprep.subr.bf16.mxu1 %v3221_v26  ;;  %v1057_v26 = vunpack.c.l.bf16 %v1056_v22  ;;  %v3331_v22 = vld [vmem:[#allocation5 + $0x2a8] ss:$28 sps:$4 sm:$0xff]  }
 0x2d1   :  { %v1067_v36 = vrot.slane %v1057_v26, %v3714_v28 }
 0x2d2   :  { %2491 = vmatpush1.bf16.msra.mxu1 %v3223_v31 }
 0x2d3   :  { %2493 = vmatprep.subr.bf16.mxu1 %v3227_v33  ;;  %v1103_v33 = vrot.slane %v1094_v25, %v3720_v30  ;;  %v3334_v25 = vld [vmem:[#allocation5 + $0x2e0] ss:$28 sps:$4 sm:$0xff]  }
 0x2d6   :  { %2495 = vmatpush1.bf16.msra.mxu1 %v3229_v35 }
 0x2d7   :  { %2497 = vmatprep.subr.bf16.mxu1 %v3233_v37 }
 0x2da   :  { %2499 = vmatpush1.bf16.msra.mxu1 %v3235_v39  ;;  %v1083_v39 = vrot.slane %v1057_v26, %v3720_v30  ;;  %v3335_v26 = vld [vmem:[#allocation5 + $0x31c] ss:$28 sps:$4 sm:$0xff]  }
 0x2db   :  { %2501 = vmatprep.subr.bf16.mxu1 %v3239_v41 }
 0x2de   :  { %2503 = vmatpush1.bf16.msra.mxu1 %v3241_v43 }
 0x2df   :  { %2505 = vmatprep.subr.bf16.mxu1 %v3245_v45  ;;  %v1986_v45 = vld [vmem:[%s3886_s10] ss:$0 sm:$0xff] }
 0x2e2   :  { %2507 = vmatpush1.bf16.msra.mxu1 %v3247_v47 }
 0x2e3   :  { %2509 = vmatprep.subr.bf16.mxu1 %v3251_v49 }
 0x2e6   :  { %2511 = vmatpush1.bf16.msra.mxu1 %v3253_v51 }
 0x2e7   :  { %2513 = vmatprep.subr.bf16.mxu1 %v3257_v53 }
 0x2ea   :  { %2515 = vmatpush1.bf16.msra.mxu1 %v3259_v56 }
 0x2eb   :  { %2517 = vmatprep.subr.bf16.mxu1 %v3263_v58 }
 0x2ee   :  { %2519 = vmatpush1.bf16.msra.mxu1 %v3265_v60 }
 0x2ef   :  { %2521 = vmatprep.subr.bf16.mxu1 %v3269_v62  ;;  %v3295_v62 = vld [vmem:[#allocation5 + $0x8] ss:$28 sps:$4 sm:$0xff]  }
 0x2f2   :  { %2523 = vmatpush1.bf16.msra.mxu1 %v3271_v0  ;;  %v3298_v0 = vld [vmem:[#allocation5 + $0x40] ss:$28 sps:$4 sm:$0xff]  }
 0x390   :  { %v2108_v54 = vpop.f32.mrb[2].mxu1 }
 0x391   :  { %v2109_v2 = vpop.f32.mrb[3].mxu1 }
 0x392   :  { %v2110_v3 = vadd.f32 %v2109_v2, %v2108_v54  ;;  %v3274_v54 = vld [vmem:[#allocation5 + $0x2b0] ss:$28 sps:$4 sm:$0xff]  }
 0x393   :  { %v3278_v2 = vld [vmem:[#allocation5 + $0x2ec] ss:$28 sps:$4 sm:$0xff]   ;;  %2651 = vmatpush1.bf16.msra.mxu0 %v3274_v54  ;;  %v3299_v54 = vld [vmem:[#allocation5 + $0x7c] ss:$28 sps:$4 sm:$0xff]  }
 0x394   :  { %v3787_v4 = vadd.f32 %v2110_v3, %v1985_v1  ;;  %v3275_v1 = vld [vmem:[#allocation5 + $0x2dc] ss:$28 sps:$4 sm:$0xff]   ;;  %2653 = vmatprep.subr.bf16.mxu0 %v3278_v2  ;;  %v3302_v2 = vld [vmem:[#allocation5 + $0xb4] ss:$28 sps:$4 sm:$0xff]  }
 0x395   :  { %v3277_v3 = vld [vmem:[#allocation5 + $0x2d8] ss:$28 sps:$4 sm:$0xff]   ;;  %2525 = vmatprep.subr.bf16.mxu1 %v3275_v1 }
 0x396   :  { %v1047_v5 = vmul.f32 0.5, %v3787_v4  ;;  %1958 = vst.msk [vmem:[%s3893_s17] sm:$0xff] %vm1957_vm4, %v3787_v4  ;;  %2527 = vmatpush1.bf16.msra.mxu1 %v3277_v3  ;;  %v3301_v1 = vld [vmem:[#allocation5 + $0x78] ss:$28 sps:$4 sm:$0xff]   ;;  %v3304_v3 = vld [vmem:[#allocation5 + $0xb0] ss:$28 sps:$4 sm:$0xff]  }
 0x397   :  { %2529 = vmatprep.subr.bf16.mxu1 %v3281_v13  ;;  %v3316_v13 = vld [vmem:[#allocation5 + $0x190] ss:$28 sps:$4 sm:$0xff]  }
 0x398   :  { %v1048_v6 = vmul.f32 1.442695, %v1047_v5  ;;  %v3280_v5 = vld [vmem:[#allocation5 + $0x2e8] ss:$28 sps:$4 sm:$0xff]  }
 0x399   :  { %2655 = vmatpush1.bf16.msra.mxu0 %v3280_v5  ;;  %v3305_v5 = vld [vmem:[#allocation5 + $0xec] ss:$28 sps:$4 sm:$0xff]  }
 0x39a   :  { %3357 = vpow2.f32 %v1048_v6  ;;  %v1183_v6 = vpop.f32.mrb[4].mxu1  ;;  %2531 = vmatpush1.bf16.msra.mxu1 %v3283_v14  ;;  %2657 = vmatprep.subr.bf16.mxu0 %v3284_v15  ;;  %v3317_v14 = vld [vmem:[#allocation5 + $0x1cc] ss:$28 sps:$4 sm:$0xff]  }
 0x39b   :  { %v1185_v8 = vpop.f32.mrb[5].mxu1  ;;  %2533 = vmatprep.subr.bf16.mxu1 %v3287_v17  ;;  %v1184_v40 = vadd.f32 %v1183_v6, %v1099_v32  ;;  %v3307_v6 = vld [vmem:[#allocation5 + $0xe8] ss:$28 sps:$4 sm:$0xff]   ;;  %v3322_v17 = vld [vmem:[#allocation5 + $0x200] ss:$28 sps:$4 sm:$0xff]  }
 0x39c   :  { %v1186_v41 = vadd.f32 %v1185_v8, %v1103_v33  ;;  %v3308_v8 = vld [vmem:[#allocation5 + $0x124] ss:$28 sps:$4 sm:$0xff]   ;;  %v3340_v32 = vld [vmem:[#allocation5 + $0x350] ss:$28 sps:$4 sm:$0xff]   ;;  %v3341_v33 = vld [vmem:[#allocation5 + $0x1d8] ss:$28 sps:$4 sm:$0xff]  }
 0x39d   :  { %2659 = vmatpush1.bf16.msra.mxu0 %v3286_v16  ;;  %v3319_v15 = vld [vmem:[#allocation5 + $0x1c8] ss:$28 sps:$4 sm:$0xff]  }
 0x39e   :  { %2535 = vmatpush1.bf16.msra.mxu1 %v3289_v18  ;;  %2661 = vmatprep.subr.bf16.mxu0 %v3290_v19  ;;  %v3320_v16 = vld [vmem:[#allocation5 + $0x204] ss:$28 sps:$4 sm:$0xff]   ;;  %v3323_v18 = vld [vmem:[#allocation5 + $0x23c] ss:$28 sps:$4 sm:$0xff]  }
 0x39f   :  { %v3325_v19 = vld [vmem:[#allocation5 + $0x238] ss:$28 sps:$4 sm:$0xff]  }
 0x3a1   :  { %2663 = vmatpush1.bf16.msra.mxu0 %v3292_v20  ;;  %v3326_v20 = vld [vmem:[#allocation5 + $0x274] ss:$28 sps:$4 sm:$0xff]  }
 0x3a4   :  { %v3358_v21 = vpop.eup %3357 }
 0x3a5   :  { %1051 = vrot.lane.b32.xlu0 %v3358_v21, %s3469_s8  ;;  %v1086_v21 = vld [vmem:[%s3887_s11] sm:$0x3] }
 0x3a6   :  { %v1087_v23 = vunpack.c.l.bf16 %v1086_v21  ;;  %v3329_v21 = vld [vmem:[#allocation5 + $0x2ac] ss:$28 sps:$4 sm:$0xff]  }
 0x3a8   :  { %v1192_v29 = vrot.slane %v1087_v23, %v3714_v28  ;;  %v1196_v31 = vrot.slane %v1087_v23, %v1195_v24  ;;  %v1214_v34 = vrot.slane %v1087_v23, %v3720_v30 }
 0x3aa   :  { %v1202_v37 = vrot.slane %v1192_v29, %v3714_v28  ;;  %v1206_v38 = vrot.slane %v1196_v31, %v3714_v28  ;;  %v1224_v42 = vrot.slane %v1214_v34, %v3720_v30  ;;  %v3337_v29 = vld [vmem:[#allocation5 + $0x318] ss:$28 sps:$4 sm:$0xff]  }
 0x3ab   :  { %v3338_v31 = vld [vmem:[#allocation5 + $0x354] ss:$28 sps:$4 sm:$0xff]  }
 0x3ac   :  { %v3342_v34 = vld [vmem:[#allocation5 + $0x18] ss:$28 sps:$4 sm:$0xff]  }
 0x417   :  { %v1052_v10 = vpop.permute.xlu0 %1051 }
 0x418   :  { %v1054_v11 = vmul.f32 %v1052_v10, %v92_v9  ;;  %v3310_v9 = vld [vmem:[#allocation5 + $0x120] ss:$28 sps:$4 sm:$0xff]  }
 0x419   :  { %v3311_v10 = vld [vmem:[#allocation5 + $0x15c] ss:$28 sps:$4 sm:$0xff]  }
 0x41a   :  { %v1055_v12 = vadd.f32 %v1054_v11, %v3787_v4  ;;  %v3293_v4 = vld [vmem:[#allocation5 + $0xc] ss:$28 sps:$4 sm:$0xff]   ;;  %v3313_v11 = vld [vmem:[#allocation5 + $0x158] ss:$28 sps:$4 sm:$0xff]  }
 0x41b   :  { %2537 = vmatprep.subr.bf16.mxu1 %v3293_v4  ;;  %v3328_v4 = vld [vmem:[#allocation5 + $0x270] ss:$28 sps:$4 sm:$0xff]  }
 0x41c   :  { %1077 = vperm.xlu1 %2976, %v1055_v12   ;;  %1061 = vperm.xlu0 %2975, %v1055_v12   ;;  %v3314_v12 = vld [vmem:[#allocation5 + $0x194] ss:$28 sps:$4 sm:$0xff]  }
 0x420   :  { %2977 = vset.pattern.permute.xlu0 %v3467_v7  ;;  %v1217_v7 = vsub.s32 3, %v3711_v27 }
 0x422   :  { %v1218_v35 = vrot.slane %v1087_v23, %v1217_v7  ;;  %v3332_v23 = vld [vmem:[#allocation5 + $0x2e4] ss:$28 sps:$4 sm:$0xff]  }
 0x424   :  { %v1228_v43 = vrot.slane %v1218_v35, %v3720_v30  ;;  %v3343_v35 = vld [vmem:[#allocation5 + $0x210] ss:$28 sps:$4 sm:$0xff]  }
 0x49b   :  { %v1078_v44 = vpop.permute.xlu1 %1077  ;;  %v1062_v46 = vpop.permute.xlu0 %1061 }
 0x49c   :  { %v1068_v47 = vmul.f32 %v1067_v36, %v1062_v46  ;;  %v1207_v48 = vmul.f32 %v1202_v37, %v1062_v46  ;;  %v1208_v49 = vmul.f32 %v1206_v38, %v1062_v46  ;;  %v1084_v50 = vmul.f32 %v1083_v39, %v1078_v44  ;;  %v3344_v36 = vld [vmem:[#allocation5 + $0x50] ss:$28 sps:$4 sm:$0xff]   ;;  %v3345_v37 = vld [vmem:[#allocation5 + $0x248] ss:$28 sps:$4 sm:$0xff]   ;;  %v3347_v39 = vld [vmem:[#allocation5 + $0x280] ss:$28 sps:$4 sm:$0xff]  }
 0x49d   :  { %v1229_v52 = vmul.f32 %v1224_v42, %v1078_v44  ;;  %v1230_v53 = vmul.f32 %v1228_v43, %v1078_v44  ;;  %v3346_v38 = vld [vmem:[#allocation5 + $0x88] ss:$28 sps:$4 sm:$0xff]   ;;  %v3350_v42 = vld [vmem:[#allocation5 + $0xf8] ss:$28 sps:$4 sm:$0xff]   ;;  %v3351_v43 = vld [vmem:[#allocation5 + $0x2f0] ss:$28 sps:$4 sm:$0xff]  }
 0x49e   :  { %v1075_v51 = vadd.f32 %v1986_v45, %v1068_v47  ;;  %v1209_v55 = vadd.f32 %v1207_v48, %v1184_v40  ;;  %v1210_v56 = vadd.f32 %v1208_v49, %v1186_v41  ;;  %v3348_v40 = vld [vmem:[#allocation5 + $0xc0] ss:$28 sps:$4 sm:$0xff]   ;;  %v3349_v41 = vld [vmem:[#allocation5 + $0x2b8] ss:$28 sps:$4 sm:$0xff]   ;;  %v3352_v44 = vld [vmem:[#allocation5 + $0x130] ss:$28 sps:$4 sm:$0xff]  }
 0x49f   :  { %v3353_v45 = vld [vmem:[#allocation5 + $0x328] ss:$28 sps:$4 sm:$0xff]   ;;  %v3355_v47 = vld [vmem:[#allocation5 + $0x360] ss:$28 sps:$4 sm:$0xff]  }
 0x4a0   :  { %v1085_v57 = vadd.f32 %v1084_v50, %v1075_v51  ;;  %v1231_v58 = vadd.f32 %v1229_v52, %v1209_v55  ;;  %v1232_v59 = vadd.f32 %v1230_v53, %v1210_v56  ;;  %v3354_v46 = vld [vmem:[#allocation5 + $0x168] ss:$28 sps:$4 sm:$0xff]   ;;  %v3356_v48 = vld [vmem:[#allocation5 + $0x1a0] ss:$28 sps:$4 sm:$0xff]   ;;  %v1607_v50 = vsub.s32 4, %v3711_v27 }
 0x4a1   :  { %v3847_v51 = vld [vmem:[%s3891_s15] sm:$0xff]  ;;  %v1611_v52 = vsub.s32 5, %v3711_v27  ;;  %s3471_s15 = smov [#allocation7]  }
 0x4a2   :  { %1960 = vrot.lane.b32.xlu1 %v1085_v57, %s3470_s13  ;;  %v3828_v60 = vmax.f32 %v1231_v58, 0.0  ;;  %v3830_v61 = vmax.f32 %v1232_v59, 0.0  ;;  %v1592_v53 = vrot.slane %v3847_v51, %v3714_v28  ;;  %v1608_v55 = vrot.slane %v3847_v51, %v1607_v50 }
 0x4a3   :  { %v1596_v56 = vrot.slane %v3847_v51, %v3720_v30  ;;  %v1612_v57 = vrot.slane %v3847_v51, %v1611_v52 }
 0x4a4   :  { %1688 = vmatprep.mubr.f32.mxu1 %v3830_v61  ;;  %1830 = vmatprep.mubr.f32.mxu0 %v3830_v61 }
 0x4a5   :  { %1689 = vmatmul.mubr.f32.vlgmr.msra.gmra.mrb[6].mxu1 %v3828_v60  ;;  %1831 = vmatmul.mubr.f32.vlgmr.msra.gmra.mrb[2].mxu0 %v3828_v60 }
 0x4a6   :  { %2539 = vmatpush1.bf16.msra.mxu1 %v3295_v62  ;;  %1759 = vmatprep.mubr.f32.mxu1 %v3830_v61 }
 0x4a7   :  { %2541 = vmatprep.subr.bf16.mxu1 %v3296_v63 }
 0x4aa   :  { %2543 = vmatpush1.bf16.msra.mxu1 %v3298_v0 }
 0x4ab   :  { %2545 = vmatprep.subr.bf16.mxu1 %v3299_v54 }
 0x4ae   :  { %2547 = vmatpush1.bf16.msra.mxu1 %v3301_v1 }
 0x4af   :  { %2549 = vmatprep.subr.bf16.mxu1 %v3302_v2 }
 0x4b2   :  { %2551 = vmatpush1.bf16.msra.mxu1 %v3304_v3 }
 0x4b3   :  { %2553 = vmatprep.subr.bf16.mxu1 %v3305_v5 }
 0x4b6   :  { %2555 = vmatpush1.bf16.msra.mxu1 %v3307_v6 }
 0x4b7   :  { %2557 = vmatprep.subr.bf16.mxu1 %v3308_v8 }
 0x4ba   :  { %2559 = vmatpush1.bf16.msra.mxu1 %v3310_v9 }
 0x4bb   :  { %2561 = vmatprep.subr.bf16.mxu1 %v3311_v10 }
 0x4be   :  { %2563 = vmatpush1.bf16.msra.mxu1 %v3313_v11 }
 0x4bf   :  { %2565 = vmatprep.subr.bf16.mxu1 %v3314_v12 }
 0x4c2   :  { %2567 = vmatpush1.bf16.msra.mxu1 %v3316_v13 }
 0x4c3   :  { %2569 = vmatprep.subr.bf16.mxu1 %v3317_v14 }
 0x4c6   :  { %2571 = vmatpush1.bf16.msra.mxu1 %v3319_v15 }
 0x4c7   :  { %2573 = vmatprep.subr.bf16.mxu1 %v3320_v16 }
 0x4ca   :  { %2575 = vmatpush1.bf16.msra.mxu1 %v3322_v17  ;;  %v1600_v17 = vrot.slane %v3847_v51, %v1195_v24  ;;  %v1615_v24 = vsub.s32 6, %v3711_v27 }
 0x4cb   :  { %2577 = vmatprep.subr.bf16.mxu1 %v3323_v18  ;;  %v1604_v18 = vrot.slane %v3847_v51, %v1217_v7 }
 0x4ce   :  { %2579 = vmatpush1.bf16.msra.mxu1 %v3325_v19 }
 0x4cf   :  { %2581 = vmatprep.subr.bf16.mxu1 %v3326_v20 }
 0x4d2   :  { %2583 = vmatpush1.bf16.msra.mxu1 %v3328_v4 }
 0x4d3   :  { %2585 = vmatprep.subr.bf16.mxu1 %v3329_v21 }
 0x4d6   :  { %2587 = vmatpush1.bf16.msra.mxu1 %v3331_v22 }
 0x4d7   :  { %2589 = vmatprep.subr.bf16.mxu1 %v3332_v23 }
 0x4da   :  { %2591 = vmatpush1.bf16.msra.mxu1 %v3334_v25 }
 0x4db   :  { %2593 = vmatprep.subr.bf16.mxu1 %v3335_v26 }
 0x4de   :  { %2595 = vmatpush1.bf16.msra.mxu1 %v3337_v29 }
 0x4df   :  { %2597 = vmatprep.subr.bf16.mxu1 %v3338_v31 }
 0x4e2   :  { %2599 = vmatpush1.bf16.msra.mxu1 %v3340_v32 }
 0x4e3   :  { %2665 = vmatprep.subr.bf16.mxu1 %v3341_v33 }
 0x4e5   :  { %1760 = vmatmul.mubr.f32.vlgmr.msra.gmra.mrb[8].mxu1 %v3828_v60 }
 0x4e6   :  { %2667 = vmatpush3.bf16.msra.mxu1 %v3342_v34  ;;  %1901 = vmatprep.mubr.f32.mxu1 %v3830_v61  ;;  %v1616_v34 = vrot.slane %v3847_v51, %v1615_v24 }
 0x4e7   :  { %2669 = vmatprep.subr.bf16.mxu1 %v3343_v35 }
 0x4ea   :  { %2671 = vmatpush3.bf16.msra.mxu1 %v3344_v36 }
 0x4eb   :  { %2673 = vmatprep.subr.bf16.mxu1 %v3345_v37 }
 0x4ee   :  { %2675 = vmatpush3.bf16.msra.mxu1 %v3346_v38 }
 0x4ef   :  { %2677 = vmatprep.subr.bf16.mxu1 %v3347_v39 }
 0x4f2   :  { %2679 = vmatpush3.bf16.msra.mxu1 %v3348_v40 }
 0x4f3   :  { %2681 = vmatprep.subr.bf16.mxu1 %v3349_v41 }
 0x4f6   :  { %2683 = vmatpush3.bf16.msra.mxu1 %v3350_v42 }
 0x4f7   :  { %2685 = vmatprep.subr.bf16.mxu1 %v3351_v43 }
 0x4fa   :  { %2687 = vmatpush3.bf16.msra.mxu1 %v3352_v44 }
 0x4fb   :  { %2689 = vmatprep.subr.bf16.mxu1 %v3353_v45 }
 0x4fe   :  { %2691 = vmatpush3.bf16.msra.mxu1 %v3354_v46 }
 0x4ff   :  { %2693 = vmatprep.subr.bf16.mxu1 %v3355_v47 }
 0x502   :  { %2695 = vmatpush3.bf16.msra.mxu1 %v3356_v48 }
 0x505   :  { %1902 = vmatmul.mubr.f32.vlgmr.msra.gmra.mrb[10].mxu1 %v3828_v60 }
 0x514   :  { %v1961_v49 = vpop.permute.xlu1 %1960 }
 0x515   :  { %1964 = vst.msk [vmem:[%s3893_s17] sm:$0xff] %vm1963_vm5, %v1961_v49  ;;  %s1971_s17 = sshll.u32 %s3471_s15, 4  ;;  %s1972_s17 = int_to_ptr.vmem [resolvable:$true] %s1971_s17 }
 0x516   :  { %s3431_s25 = scalar_lea.vmem %s1972_s17, 896  ;;  %p3436_p3 = scmp.lt.s32.totalorder %s1972_s17, %s1972_s17 }
 0x517   :  { %p3432_p2 = scmp.ne.s32.totalorder %s1972_s17, %s3431_s25  ;;  %p3437_p4 = scmp.lt.s32.totalorder %s3431_s25, %s3431_s25 }
 0x519   :  { %p3438_p5 = por %p3437_p4, %p3436_p3 }
 0x51b   :  { %p3439_p6 = pnand %p3438_p5, %p3432_p2 }
 0x578   :  { %v1690_v58 = vpop.f32.mrb[6].mxu1  ;;  %v1832_v59 = vpop.f32.mrb[2].mxu0 }
 0x579   :  { %v1691_v60 = vadd.f32 %v1690_v58, %v1592_v53  ;;  %v1833_v61 = vadd.f32 %v1832_v59, %v1608_v55  ;;  %v1692_v62 = vpop.f32.mrb[7].mxu1  ;;  %v1834_v63 = vpop.f32.mrb[3].mxu0 }
 0x57a   :  { %v1693_v0 = vadd.f32 %v1692_v62, %v1596_v56  ;;  %v1835_v54 = vadd.f32 %v1834_v63, %v1612_v57 }
 0x57b   :  { %v1990_v1 = vmul.f32 -1.442695, %v1691_v60  ;;  %v1994_v2 = vmul.f32 -1.442695, %v1833_v61 }
 0x57c   :  { %v1991_v3 = vmul.f32 -1.442695, %v1693_v0  ;;  %v1995_v5 = vmul.f32 -1.442695, %v1835_v54 }
 0x57d   :  { %3359 = vpow2.f32 %v1990_v1 }
 0x57e   :  { %3361 = vpow2.f32 %v1994_v2 }
 0x57f   :  { %3363 = vpow2.f32 %v1991_v3 }
 0x580   :  { %3365 = vpow2.f32 %v1995_v5 }
 0x587   :  { %v3360_v28 = vpop.eup %3359 }
 0x588   :  { %v3362_v30 = vpop.eup %3361  ;;  %v1928_v6 = vadd.f32 1.0, %v3360_v28 }
 0x589   :  { %v3364_v8 = vpop.eup %3363  ;;  %v1932_v9 = vadd.f32 1.0, %v3362_v30 }
 0x58a   :  { %v3366_v10 = vpop.eup %3365  ;;  %3367 = vrcp.f32 %v1928_v6  ;;  %v1929_v11 = vadd.f32 1.0, %v3364_v8 }
 0x58b   :  { %3369 = vrcp.f32 %v1932_v9  ;;  %v1933_v12 = vadd.f32 1.0, %v3366_v10 }
 0x58c   :  { %3371 = vrcp.f32 %v1929_v11 }
 0x58d   :  { %3373 = vrcp.f32 %v1933_v12 }
 0x594   :  { %v3368_v13 = vpop.eup %3367 }
 0x595   :  { %v3370_v14 = vpop.eup %3369  ;;  %1949 = vst [vmem:[#allocation7] sm:$0xff] %v3368_v13 }
 0x596   :  { %v3372_v15 = vpop.eup %3371  ;;  %1953 = vst [vmem:[#allocation7 + $0x20] sm:$0xff] %v3370_v14 }
 0x597   :  { %v3374_v16 = vpop.eup %3373  ;;  %1950 = vst [vmem:[#allocation7 + $0x8] sm:$0xff] %v3372_v15 }
 0x598   :  { %1954 = vst [vmem:[#allocation7 + $0x28] sm:$0xff] %v3374_v16 }
 0x5b8   :  { %v1761_v19 = vpop.f32.mrb[8].mxu1 }
 0x5b9   :  { %v1762_v20 = vadd.f32 %v1761_v19, %v1600_v17  ;;  %v1763_v4 = vpop.f32.mrb[9].mxu1 }
 0x5ba   :  { %v1764_v21 = vadd.f32 %v1763_v4, %v1604_v18 }
 0x5bb   :  { %v1992_v22 = vmul.f32 -1.442695, %v1762_v20 }
 0x5bc   :  { %v1993_v23 = vmul.f32 -1.442695, %v1764_v21 }
 0x5bd   :  { %3375 = vpow2.f32 %v1992_v22 }
 0x5be   :  { %3377 = vpow2.f32 %v1993_v23 }
 0x5c7   :  { %v3376_v25 = vpop.eup %3375 }
 0x5c8   :  { %v3378_v26 = vpop.eup %3377  ;;  %v1930_v29 = vadd.f32 1.0, %v3376_v25 }
 0x5c9   :  { %v1931_v31 = vadd.f32 1.0, %v3378_v26 }
 0x5ca   :  { %3379 = vrcp.f32 %v1930_v29 }
 0x5cb   :  { %3381 = vrcp.f32 %v1931_v31 }
 0x5d4   :  { %v3380_v32 = vpop.eup %3379 }
 0x5d5   :  { %v3382_v33 = vpop.eup %3381  ;;  %1951 = vst [vmem:[#allocation7 + $0x10] sm:$0xff] %v3380_v32 }
 0x5d6   :  { %1952 = vst [vmem:[#allocation7 + $0x18] sm:$0xff] %v3382_v33 }
 0x5d8   :  { %v2143_v7 = vpop.f32.mrb[10].mxu1 }
 0x5d9   :  { %v2144_v35 = vpop.f32.mrb[11].mxu1 }
 0x5da   :  { %v2145_v36 = vadd.f32 %v2144_v35, %v2143_v7 }
 0x5dc   :  { %v1904_v37 = vadd.f32 %v2145_v36, %v1616_v34 }
 0x5de   :  { %v1996_v38 = vmul.f32 -1.442695, %v1904_v37 }
 0x5e0   :  { %3383 = vpow2.f32 %v1996_v38 }
 0x5ea   :  { %v3384_v39 = vpop.eup %3383 }
 0x5eb   :  { %v1934_v40 = vadd.f32 1.0, %v3384_v39 }
 0x5ed   :  { %3385 = vrcp.f32 %v1934_v40 }
 0x5f7   :  { %v3386_v41 = vpop.eup %3385 }
 0x5f8   :  { %1955 = vst [vmem:[#allocation7 + $0x30] sm:$0xff] %v3386_v41 }
 0x5f9   :  { %3442 = shalt.err (!%p3439_p6)
}
 0x5fa   :  { %s3443_s6 = scalar_lea.hbm %s3892_s16, 896 }
 0x5fb   :  { %p3444_p7 = scmp.ne.s32.totalorder %s3892_s16, %s3443_s6  ;;  %p3447_p8 = scmp.lt.u32.totalorder %s3443_s6, %s3892_s16 }
 0x5fd   :  { %p3449_p9 = pnand %p3447_p8, %p3444_p7 }
 0x5ff   :  { %3452 = shalt.err (!%p3449_p9)
}
 0x600   :  { %1974 = dma.vmem_to_hbm [thread:$0]  %s1972_s17, 896, %s3892_s16, [#allocation4]  }
 0x601   :  { %3457 = dma.done.wait [#allocation4], 896  }
 0x602   :  { %3458 = vsyncadd [#allocation4], 4294966400 }
 0x603   :  { %1982 = vsyncpa [#allocation3], 1 }
 0x604   :  { %1983 = vsyncpa [#allocation6], 1 }
 0x605   :  { %1984 = vsyncpa [#allocation4], 1 }

</bundles_post_ra>
